<compile_context>
chip_gen: v7x
topology: tpu7x:2x2x1
jax: 0.10.0
libtpu: 0.0.40
codegen_flags: <defaults>
</compile_context>

<pallas_src>
import functools

import jax
import jax.numpy as jnp
from jax import lax
from jax.experimental import pallas as pl
from jax.experimental.pallas import tpu as pltpu


# ----------------------------------------------------------------------------
# Static architecture description (VAE1D): (out_channels, kernel==stride).
# ----------------------------------------------------------------------------
_ENC = ((32, 4), (64, 4), (128, 2), (256, 2))      # Conv1d layers
_DEC = ((128, 2), (64, 2), (32, 4), (1, 4))        # ConvTranspose1d layers (last cout -> image_channels)

_SLAB256 = ("e2", "e3", "e4", "fc12", "g1", "g2")  # packed weights with 256 columns
_SLAB512 = ("e1", "g3")                            # packed weights with 512 columns
_BIAS_ORDER = ("eb1", "eb2", "eb3", "eb4", "bfc12", "gb1", "gb2", "gb3", "gb4")


def _layer_dims(h_dim, z_dim, length, n_pos, image_channels):
    """(rows, cols) of every packed block-diagonal / stacked matmul weight."""
    dims = {}
    pos, cin = length // n_pos, image_channels
    for i, (cout, k) in enumerate(_ENC, 1):
        copies = pos // k
        dims[f"e{i}"] = (k * cin * copies, cout * copies)
        pos, cin = copies, cout
    assert pos == 1 and cin * n_pos == h_dim
    dims["fc12"] = (h_dim // n_pos, n_pos * 2 * z_dim)
    dims["fc3"] = (z_dim, h_dim)
    dec = _DEC[:-1] + ((image_channels, _DEC[-1][1]),)
    pos, cin = 1, h_dim // n_pos
    for i, (cout, k) in enumerate(dec, 1):
        dims[f"g{i}"] = (cin * pos, k * cout * pos)
        pos, cin = pos * k, cout
    return dims


def _slab_offsets(dims):
    """Row offsets of each packed matrix inside its slab (pure Python ints)."""
    w256, w512 = {}, {}
    r = 0
    for n in _SLAB256:
        w256[n] = r
        r += dims[n][0]
    r = 0
    for n in _SLAB512:
        w512[n] = r
        r += dims[n][0]
    bias = {n: i for i, n in enumerate(_BIAS_ORDER)}
    bias["bfc3"] = len(_BIAS_ORDER)                # n_pos rows from here
    return w256, w512, bias


# ----------------------------------------------------------------------------
# Fused forward kernel: one invocation, whole batch in the M dimension.
# Row layout is position-major: row r = l * B + b  (l = bottleneck position).
# ----------------------------------------------------------------------------
def _vae1d_kernel(x_ref, eps_ref, w256_ref, w512_ref, wfc3_ref, wg4_ref, bias_ref,
                  out_ref, mulv_ref,
                  *, n_pos, n_b, z_dim, cpr, dims, w256_offs, w512_offs, bias_offs):
    f32, bf16 = jnp.float32, jnp.bfloat16
    rows = n_pos * n_b
    two_z = 2 * z_dim

    def wmat(name):                                 # static slice of a weight slab
        nrows = dims[name][0]
        if name in w256_offs:
            o = w256_offs[name]
            return w256_ref[o:o + nrows, :]
        o = w512_offs[name]
        return w512_ref[o:o + nrows, :]

    def bvec(name, width):                          # (1, width) bias row
        r = bias_offs[name]
        return bias_ref[r:r + 1, :width]

    def mm(a, w, b, act=None):
        # bf16 MXU matmul, f32 accumulation, f32 bias/activation epilogue.
        acc = jnp.dot(a.astype(bf16), w, preferred_element_type=f32) + b
        if act == "relu":
            acc = jnp.maximum(acc, 0.0)
        elif act == "sigmoid":
            acc = jax.nn.sigmoid(acc)
        return acc

    # ---- encoder: each Conv1d(stride==kernel) is one block-diagonal matmul.
    a = x_ref[...]                                                     # (rows, 64) f32
    a = mm(a, wmat("e1"), bvec("eb1", dims["e1"][1]), "relu")          # (rows, 512)
    a = mm(a, wmat("e2"), bvec("eb2", dims["e2"][1]), "relu")          # (rows, 256)
    a = mm(a, wmat("e3"), bvec("eb3", dims["e3"][1]), "relu")          # (rows, 256)
    h = mm(a, wmat("e4"), bvec("eb4", dims["e4"][1]), "relu")          # (rows, 256) channels-last

    # ---- bottleneck: fc1|fc2 as ONE matmul (column block l holds the weights
    #      for position l), then sum the diagonal blocks over positions.
    p_all = jnp.dot(h.astype(bf16), wmat("fc12"), preferred_element_type=f32)  # (rows, n_pos*2z)
    ml = bvec("bfc12", two_z)                                          # (1, 2z) broadcasts
    for l in range(n_pos):
        ml = ml + p_all[l * n_b:(l + 1) * n_b, l * two_z:(l + 1) * two_z]
    mu, logvar = ml[:, :z_dim], ml[:, z_dim:]
    zlat = mu + jnp.exp(0.5 * logvar) * eps_ref[...]                   # (B, z)
    mulv_ref[...] = ml                                                 # packed (mu | logvar)

    # ---- fc3 + UnFlatten1D, fully in registers (no scratch round trip):
    #      replicate z across the n_pos row blocks with a tiny 0/1 matmul, run
    #      ONE matmul against the column-stacked fc3 weight, then pick the
    #      per-row position block with iota masks.
    i0 = lax.broadcasted_iota(jnp.int32, (rows, n_b), 0)
    i1 = lax.broadcasted_iota(jnp.int32, (rows, n_b), 1)
    rep = jnp.zeros((rows, n_b), f32)
    for l in range(n_pos):
        rep = rep + (i0 == i1 + l * n_b).astype(f32)                   # rep[r, b] = 1 iff r = l*B + b
    zrep = jnp.dot(rep, zlat, preferred_element_type=f32)              # (rows, z)
    d_all = jnp.dot(zrep.astype(bf16), wfc3_ref[...],
                    preferred_element_type=f32)                        # (rows, n_pos*256)

    ri = lax.broadcasted_iota(jnp.int32, (rows, 1), 0)
    boff = bias_offs["bfc3"]
    d = jnp.zeros((rows, cpr), f32)
    for l in range(n_pos):
        msk = ((ri >= l * n_b) & (ri < (l + 1) * n_b)).astype(f32)     # rows of position l
        blk = d_all[:, l * cpr:(l + 1) * cpr] + bias_ref[boff + l:boff + l + 1, :cpr]
        d = d + msk * blk                                              # (rows, 256), no ReLU here

    # ---- decoder: each ConvTranspose1d(stride==kernel) is one block-diagonal
    #      matmul; nested (position, channel) column packing = output order.
    d = mm(d, wmat("g1"), bvec("gb1", dims["g1"][1]), "relu")          # (rows, 256)
    d = mm(d, wmat("g2"), bvec("gb2", dims["g2"][1]), "relu")          # (rows, 256)
    d = mm(d, wmat("g3"), bvec("gb3", dims["g3"][1]), "relu")          # (rows, 512)
    d = mm(d, wg4_ref[...], bvec("gb4", dims["g4"][1]), "sigmoid")     # (rows, 64)
    out_ref[...] = d


# ----------------------------------------------------------------------------
# JAX wrapper: single pallas_call, no grid (whole problem in one VMEM-resident
# invocation -- weights ~1.4 MiB bf16 + activations ~100 KiB).
# ----------------------------------------------------------------------------
def vae1d_forward(x, kp, eps):
    """x: (B, 1, L) f32, eps: (B, z_dim) f32 -> (recon (B,1,L), mu, logvar)."""
    B, C, L = x.shape
    assert C == 1
    z_dim = eps.shape[1]

    stride = 1
    for _, k in _ENC:
        stride *= k
    assert L % stride == 0
    n_pos = L // stride                    # bottleneck length (4 for L=256)
    h_dim = _ENC[-1][0] * n_pos            # 1024
    cpr = h_dim // n_pos                   # 256 channels per bottleneck position
    chunk = L // n_pos                     # 64 input samples per packed row
    rows = n_pos * B

    dims = _layer_dims(h_dim, z_dim, L, n_pos, C)
    w256_offs, w512_offs, bias_offs = _slab_offsets(dims)

    # position-major packing: row l*B + b holds input samples [l*chunk, (l+1)*chunk)
    x_p = x.reshape(B, n_pos, chunk).transpose(1, 0, 2).reshape(rows, chunk)

    kernel = functools.partial(
        _vae1d_kernel, n_pos=n_pos, n_b=B, z_dim=z_dim, cpr=cpr,
        dims=dims, w256_offs=w256_offs, w512_offs=w512_offs, bias_offs=bias_offs)

    vmem = pl.BlockSpec(memory_space=pltpu.MemorySpace.VMEM)
    out, mulv = pl.pallas_call(
        kernel,
        in_specs=[vmem] * 7,
        out_specs=[vmem, vmem],
        out_shape=[jax.ShapeDtypeStruct((rows, chunk), jnp.float32),
                   jax.ShapeDtypeStruct((B, 2 * z_dim), jnp.float32)],
    )(x_p, eps, kp["w256"], kp["w512"], kp["wfc3"], kp["wg4"], kp["bias"])

    recon = out.reshape(n_pos, B, chunk).transpose(1, 0, 2).reshape(B, C, L)
    return recon, mulv[:, :z_dim], mulv[:, z_dim:]


# ----------------------------------------------------------------------------
# One-time parameter preparation (PyTorch layout -> packed slabs).
# ----------------------------------------------------------------------------
def prepare_params(p, h_dim=1024, z_dim=32, length=256, image_channels=1):
    f32, bf16 = jnp.float32, jnp.bfloat16
    stride = 1
    for _, k in _ENC:
        stride *= k
    n_pos = length // stride
    assert h_dim == _ENC[-1][0] * n_pos
    cpr = h_dim // n_pos
    dims = _layer_dims(h_dim, z_dim, length, n_pos, image_channels)

    def bdiag(m, copies):
        return jnp.kron(jnp.eye(copies, dtype=m.dtype), m)

    def enc_packed(w, copies):             # Conv1d (Cout,Cin,k) -> (copies*k*Cin, copies*Cout)
        cout, cin, k = w.shape
        patch = jnp.transpose(w, (2, 1, 0)).reshape(k * cin, cout)
        return bdiag(patch, copies)

    def dec_packed(w, copies):             # ConvT1d (Cin,Cout,k) -> (copies*Cin, copies*k*Cout)
        cin, cout, k = w.shape
        patch = jnp.transpose(w, (0, 2, 1)).reshape(cin, k * cout)
        return bdiag(patch, copies)

    mats, biases = {}, {}
    pos = length // n_pos
    for i in range(1, 5):
        w, b = p[f"e{i}_w"], p[f"e{i}_b"]
        k = w.shape[2]
        copies = pos // k
        mats[f"e{i}"] = enc_packed(w, copies)
        biases[f"eb{i}"] = jnp.tile(b, copies)
        pos = copies
    assert pos == 1

    # fc1|fc2 fused; torch flatten index is c*n_pos + l, so a plain reshape puts
    # position l's weights into column block l.
    wfc12 = jnp.concatenate([p["fc1_w"], p["fc2_w"]], axis=1)          # (h_dim, 2z)
    mats["fc12"] = wfc12.reshape(cpr, n_pos * 2 * z_dim)
    biases["bfc12"] = jnp.concatenate([p["fc1_b"], p["fc2_b"]])

    # fc3; columns regrouped to (position, channel) order.
    mats["fc3"] = jnp.transpose(p["fc3_w"].reshape(z_dim, cpr, n_pos),
                                (0, 2, 1)).reshape(z_dim, h_dim)
    bfc3_pos = jnp.transpose(p["fc3_b"].reshape(cpr, n_pos))           # (n_pos, cpr)

    pos = 1
    for i in range(1, 5):
        w, b = p[f"d{i}_w"], p[f"d{i}_b"]
        k = w.shape[2]
        mats[f"g{i}"] = dec_packed(w, pos)
        pos = pos * k
        biases[f"gb{i}"] = jnp.tile(b, pos)

    for name, m in mats.items():
        assert tuple(m.shape) == tuple(dims[name]), (name, m.shape, dims[name])

    # --- pack into slabs (fewer, larger DMAs) -------------------------------
    kp = {
        "w256": jnp.concatenate([mats[n] for n in _SLAB256], axis=0).astype(bf16),
        "w512": jnp.concatenate([mats[n] for n in _SLAB512], axis=0).astype(bf16),
        "wfc3": mats["fc3"].astype(bf16),
        "wg4": mats["g4"].astype(bf16),
    }
    bias_width = max(max(int(v.shape[-1]) for v in biases.values()), cpr)

    def pad_row(v):
        v = v.reshape(1, -1)
        return jnp.pad(v, ((0, 0), (0, bias_width - v.shape[1])))

    bias_rows = [pad_row(biases[n]) for n in _BIAS_ORDER]
    bias_rows.append(jnp.pad(bfc3_pos, ((0, 0), (0, bias_width - cpr))))
    kp["bias"] = jnp.concatenate(bias_rows, axis=0).astype(f32)
    return kp


# ----------------------------------------------------------------------------
# Deterministic synthetic parameter init (shapes from VAE1D.__init__).
# ----------------------------------------------------------------------------
def init_params(key, image_channels=1, h_dim=1024, z_dim=32):
    assert h_dim % 4 == 0
    ks = iter(jax.random.split(key, 32))

    def u(shape, fan_in):
        bound = 1.0 / float(fan_in) ** 0.5
        return jax.random.uniform(next(ks), shape, jnp.float32, -bound, bound)

    p = {}
    p["e1_w"], p["e1_b"] = u((32, image_channels, 4), image_channels * 4), u((32,), image_channels * 4)
    p["e2_w"], p["e2_b"] = u((64, 32, 4), 32 * 4), u((64,), 32 * 4)
    p["e3_w"], p["e3_b"] = u((128, 64, 2), 64 * 2), u((128,), 64 * 2)
    p["e4_w"], p["e4_b"] = u((256, 128, 2), 128 * 2), u((256,), 128 * 2)
    p["fc1_w"], p["fc1_b"] = u((h_dim, z_dim), h_dim), u((z_dim,), h_dim)
    p["fc2_w"], p["fc2_b"] = u((h_dim, z_dim), h_dim), u((z_dim,), h_dim)
    p["fc3_w"], p["fc3_b"] = u((z_dim, h_dim), z_dim), u((h_dim,), z_dim)
    c0 = h_dim // 4
    p["d1_w"], p["d1_b"] = u((c0, 128, 2), c0 * 2), u((128,), c0 * 2)
    p["d2_w"], p["d2_b"] = u((128, 64, 2), 128 * 2), u((64,), 128 * 2)
    p["d3_w"], p["d3_b"] = u((64, 32, 4), 64 * 4), u((32,), 64 * 4)
    p["d4_w"], p["d4_b"] = u((32, image_channels, 4), 32 * 4), u((image_channels,), 32 * 4)
    return p


# ----------------------------------------------------------------------------
# Pure-JAX float32 reference of the PyTorch module (numerical validation).
# ----------------------------------------------------------------------------
def ref_forward(x, p, eps, h_dim=1024):
    def conv1d(x, w, b):                   # stride == kernel_size
        B, cin, L = x.shape
        _, _, k = w.shape
        xr = x.reshape(B, cin, L // k, k)
        return jnp.einsum("bclk,ock->bol", xr, w) + b[None, :, None]

    def convT1d(x, w, b):                  # stride == kernel_size
        B, cin, L = x.shape
        _, cout, k = w.shape
        y = jnp.einsum("bcl,coj->bolj", x, w).reshape(B, cout, L * k)
        return y + b[None, :, None]

    h = x
    h = jax.nn.relu(conv1d(h, p["e1_w"], p["e1_b"]))
    h = jax.nn.relu(conv1d(h, p["e2_w"], p["e2_b"]))
    h = jax.nn.relu(conv1d(h, p["e3_w"], p["e3_b"]))
    h = jax.nn.relu(conv1d(h, p["e4_w"], p["e4_b"]))
    hf = h.reshape(h.shape[0], -1)                             # Flatten
    mu = hf @ p["fc1_w"] + p["fc1_b"]
    logvar = hf @ p["fc2_w"] + p["fc2_b"]
    z = mu + jnp.exp(0.5 * logvar) * eps                       # reparameterize
    d = (z @ p["fc3_w"] + p["fc3_b"]).reshape(z.shape[0], h_dim // 4, 4)
    d = jax.nn.relu(convT1d(d, p["d1_w"], p["d1_b"]))
    d = jax.nn.relu(convT1d(d, p["d2_w"], p["d2_b"]))
    d = jax.nn.relu(convT1d(d, p["d3_w"], p["d3_b"]))
    d = jax.nn.sigmoid(convT1d(d, p["d4_w"], p["d4_b"]))
    return d, mu, logvar


if __name__ == "__main__":
    key = jax.random.PRNGKey(0)
    kx, kw, ke = jax.random.split(key, 3)

    B, C, L = 2, 1, 256                    # encoder lengths: 256 -> 64 -> 16 -> 8 -> 4
    h_dim, z_dim = 1024, 32                # flatten: 256 channels * 4 = h_dim

    x = jax.random.normal(kx, (B, C, L), jnp.float32)
    params = init_params(kw, image_channels=C, h_dim=h_dim, z_dim=z_dim)
    # NOTE: the PyTorch module draws eps internally (CUDA RNG); here it is an
    # explicit input so the kernel is deterministic.
    eps = jax.random.normal(ke, (B, z_dim), jnp.float32)

    kparams = prepare_params(params, h_dim=h_dim, z_dim=z_dim, length=L, image_channels=C)

    fwd = jax.jit(vae1d_forward)
    recon, mu, logvar = fwd(x, kparams, eps)
    jax.block_until_ready((recon, mu, logvar))

    # shape / range sanity
    assert recon.shape == (B, C, L)
    assert mu.shape == (B, z_dim) and logvar.shape == (B, z_dim)
    assert bool(jnp.all(jnp.isfinite(recon)))
    assert bool(jnp.all((recon >= 0.0) & (recon <= 1.0)))

    # numerical check against the pure-JAX f32 reference (kernel uses bf16 MXU
    # inputs with f32 accumulation, so allow a loose tolerance).
    r_recon, r_mu, r_logvar = ref_forward(x, params, eps, h_dim=h_dim)
    assert bool(jnp.allclose(recon, r_recon, atol=5e-2, rtol=5e-2))
    assert bool(jnp.allclose(mu, r_mu, atol=5e-2, rtol=5e-2))
    assert bool(jnp.allclose(logvar, r_logvar, atol=5e-2, rtol=5e-2))

    print("KERNEL_OK")
</pallas_src>

<mosaic_0001>
module attributes {stable_mosaic.version = 11 : i64} {
  func.func @_vae1d_kernel(%arg0: memref<8x64xf32, #tpu.memory_space<vmem>>, %arg1: memref<2x32xf32, #tpu.memory_space<vmem>>, %arg2: memref<1792x256xbf16, #tpu.memory_space<vmem>>, %arg3: memref<320x512xbf16, #tpu.memory_space<vmem>>, %arg4: memref<32x1024xbf16, #tpu.memory_space<vmem>>, %arg5: memref<512x64xbf16, #tpu.memory_space<vmem>>, %arg6: memref<13x512xf32, #tpu.memory_space<vmem>>, %arg7: memref<8x64xf32, #tpu.memory_space<vmem>>, %arg8: memref<2x64xf32, #tpu.memory_space<vmem>>) attributes {dimension_semantics = [], scalar_prefetch = 0 : i64, scratch_operands = 0 : i64, tpu.core_type = #tpu.core_type<tc>} {
    %c0 = arith.constant 0 : index
    %c0_0 = arith.constant 0 : index
    %0 = vector.load %arg0[%c0, %c0_0] : memref<8x64xf32, #tpu.memory_space<vmem>>, vector<8x64xf32>
    %c0_1 = arith.constant 0 : index
    %c0_2 = arith.constant 0 : index
    %1 = vector.load %arg3[%c0_1, %c0_2] : memref<320x512xbf16, #tpu.memory_space<vmem>>, vector<64x512xbf16>
    %c0_3 = arith.constant 0 : index
    %c0_4 = arith.constant 0 : index
    %2 = vector.load %arg6[%c0_3, %c0_4] : memref<13x512xf32, #tpu.memory_space<vmem>>, vector<1x512xf32>
    %3 = arith.truncf %0 : vector<8x64xf32> to vector<8x64xbf16>
    %cst = arith.constant dense<0.000000e+00> : vector<8x512xf32>
    %4 = tpu.matmul %3, %1, %cst {dimension_numbers = #tpu.dot_dimension_numbers<[1], [0], [0], [1], [0, 0, 1, 1], [], []>} : vector<8x64xbf16>, vector<64x512xbf16>, vector<8x512xf32> -> vector<8x512xf32>
    %5 = vector.broadcast %2 : vector<1x512xf32> to vector<8x512xf32>
    %6 = arith.addf %4, %5 : vector<8x512xf32>
    %cst_5 = arith.constant 0.000000e+00 : f32
    %7 = vector.broadcast %cst_5 : f32 to vector<8x512xf32>
    %8 = arith.maximumf %6, %7 : vector<8x512xf32>
    %c0_6 = arith.constant 0 : index
    %c0_7 = arith.constant 0 : index
    %9 = vector.load %arg2[%c0_6, %c0_7] : memref<1792x256xbf16, #tpu.memory_space<vmem>>, vector<512x256xbf16>
    %c1 = arith.constant 1 : index
    %c0_8 = arith.constant 0 : index
    %10 = vector.load %arg6[%c1, %c0_8] : memref<13x512xf32, #tpu.memory_space<vmem>>, vector<1x256xf32>
    %11 = arith.truncf %8 : vector<8x512xf32> to vector<8x512xbf16>
    %cst_9 = arith.constant dense<0.000000e+00> : vector<8x256xf32>
    %12 = tpu.matmul %11, %9, %cst_9 {dimension_numbers = #tpu.dot_dimension_numbers<[1], [0], [0], [1], [0, 0, 1, 1], [], []>} : vector<8x512xbf16>, vector<512x256xbf16>, vector<8x256xf32> -> vector<8x256xf32>
    %13 = vector.broadcast %10 : vector<1x256xf32> to vector<8x256xf32>
    %14 = arith.addf %12, %13 : vector<8x256xf32>
    %cst_10 = arith.constant 0.000000e+00 : f32
    %15 = vector.broadcast %cst_10 : f32 to vector<8x256xf32>
    %16 = arith.maximumf %14, %15 : vector<8x256xf32>
    %c512 = arith.constant 512 : index
    %c0_11 = arith.constant 0 : index
    %17 = vector.load %arg2[%c512, %c0_11] : memref<1792x256xbf16, #tpu.memory_space<vmem>>, vector<256x256xbf16>
    %c2 = arith.constant 2 : index
    %c0_12 = arith.constant 0 : index
    %18 = vector.load %arg6[%c2, %c0_12] : memref<13x512xf32, #tpu.memory_space<vmem>>, vector<1x256xf32>
    %19 = arith.truncf %16 : vector<8x256xf32> to vector<8x256xbf16>
    %cst_13 = arith.constant dense<0.000000e+00> : vector<8x256xf32>
    %20 = tpu.matmul %19, %17, %cst_13 {dimension_numbers = #tpu.dot_dimension_numbers<[1], [0], [0], [1], [0, 0, 1, 1], [], []>} : vector<8x256xbf16>, vector<256x256xbf16>, vector<8x256xf32> -> vector<8x256xf32>
    %21 = vector.broadcast %18 : vector<1x256xf32> to vector<8x256xf32>
    %22 = arith.addf %20, %21 : vector<8x256xf32>
    %cst_14 = arith.constant 0.000000e+00 : f32
    %23 = vector.broadcast %cst_14 : f32 to vector<8x256xf32>
    %24 = arith.maximumf %22, %23 : vector<8x256xf32>
    %c768 = arith.constant 768 : index
    %c0_15 = arith.constant 0 : index
    %25 = vector.load %arg2[%c768, %c0_15] : memref<1792x256xbf16, #tpu.memory_space<vmem>>, vector<256x256xbf16>
    %c3 = arith.constant 3 : index
    %c0_16 = arith.constant 0 : index
    %26 = vector.load %arg6[%c3, %c0_16] : memref<13x512xf32, #tpu.memory_space<vmem>>, vector<1x256xf32>
    %27 = arith.truncf %24 : vector<8x256xf32> to vector<8x256xbf16>
    %cst_17 = arith.constant dense<0.000000e+00> : vector<8x256xf32>
    %28 = tpu.matmul %27, %25, %cst_17 {dimension_numbers = #tpu.dot_dimension_numbers<[1], [0], [0], [1], [0, 0, 1, 1], [], []>} : vector<8x256xbf16>, vector<256x256xbf16>, vector<8x256xf32> -> vector<8x256xf32>
    %29 = vector.broadcast %26 : vector<1x256xf32> to vector<8x256xf32>
    %30 = arith.addf %28, %29 : vector<8x256xf32>
    %cst_18 = arith.constant 0.000000e+00 : f32
    %31 = vector.broadcast %cst_18 : f32 to vector<8x256xf32>
    %32 = arith.maximumf %30, %31 : vector<8x256xf32>
    %33 = arith.truncf %32 : vector<8x256xf32> to vector<8x256xbf16>
    %c1024 = arith.constant 1024 : index
    %c0_19 = arith.constant 0 : index
    %34 = vector.load %arg2[%c1024, %c0_19] : memref<1792x256xbf16, #tpu.memory_space<vmem>>, vector<256x256xbf16>
    %cst_20 = arith.constant dense<0.000000e+00> : vector<8x256xf32>
    %35 = tpu.matmul %33, %34, %cst_20 {dimension_numbers = #tpu.dot_dimension_numbers<[1], [0], [0], [1], [0, 0, 1, 1], [], []>} : vector<8x256xbf16>, vector<256x256xbf16>, vector<8x256xf32> -> vector<8x256xf32>
    %c4 = arith.constant 4 : index
    %c0_21 = arith.constant 0 : index
    %36 = vector.load %arg6[%c4, %c0_21] : memref<13x512xf32, #tpu.memory_space<vmem>>, vector<1x64xf32>
    %37 = vector.extract_strided_slice %35 {offsets = [0, 0], sizes = [2, 64], strides = [1, 1]} : vector<8x256xf32> to vector<2x64xf32>
    %38 = vector.broadcast %36 : vector<1x64xf32> to vector<2x64xf32>
    %39 = arith.addf %38, %37 : vector<2x64xf32>
    %40 = vector.extract_strided_slice %35 {offsets = [2, 64], sizes = [2, 64], strides = [1, 1]} : vector<8x256xf32> to vector<2x64xf32>
    %41 = arith.addf %39, %40 : vector<2x64xf32>
    %42 = vector.extract_strided_slice %35 {offsets = [4, 128], sizes = [2, 64], strides = [1, 1]} : vector<8x256xf32> to vector<2x64xf32>
    %43 = arith.addf %41, %42 : vector<2x64xf32>
    %44 = vector.extract_strided_slice %35 {offsets = [6, 192], sizes = [2, 64], strides = [1, 1]} : vector<8x256xf32> to vector<2x64xf32>
    %45 = arith.addf %43, %44 : vector<2x64xf32>
    %46 = vector.extract_strided_slice %45 {offsets = [0, 0], sizes = [2, 32], strides = [1, 1]} : vector<2x64xf32> to vector<2x32xf32>
    %47 = vector.extract_strided_slice %45 {offsets = [0, 32], sizes = [2, 32], strides = [1, 1]} : vector<2x64xf32> to vector<2x32xf32>
    %cst_22 = arith.constant 5.000000e-01 : f32
    %48 = vector.broadcast %cst_22 : f32 to vector<2x32xf32>
    %49 = arith.mulf %48, %47 : vector<2x32xf32>
    %50 = math.exp %49 : vector<2x32xf32>
    %c0_23 = arith.constant 0 : index
    %c0_24 = arith.constant 0 : index
    %51 = vector.load %arg1[%c0_23, %c0_24] : memref<2x32xf32, #tpu.memory_space<vmem>>, vector<2x32xf32>
    %52 = arith.mulf %50, %51 : vector<2x32xf32>
    %53 = arith.addf %46, %52 : vector<2x32xf32>
    %c0_25 = arith.constant 0 : index
    %c0_26 = arith.constant 0 : index
    %54 = vector.load %arg8[%c0_25, %c0_26] : memref<2x64xf32, #tpu.memory_space<vmem>>, vector<2x64xf32>
    tpu.vector_store %arg8[%c0_25, %c0_26], %45 {strides = array<i32>} : memref<2x64xf32, #tpu.memory_space<vmem>>, vector<2x64xf32>,
    %55 = tpu.iota {dimensions = array<i32: 0>} : vector<8x2xi32>
    %56 = tpu.iota {dimensions = array<i32: 1>} : vector<8x2xi32>
    %cst_27 = arith.constant 0.000000e+00 : f32
    %57 = vector.broadcast %cst_27 : f32 to vector<8x2xf32>
    %c0_i32 = arith.constant 0 : i32
    %58 = vector.broadcast %c0_i32 : i32 to vector<8x2xi32>
    %59 = arith.addi %56, %58 : vector<8x2xi32>
    %60 = arith.cmpi eq, %55, %59 : vector<8x2xi32>
    %61 = arith.extui %60 : vector<8x2xi1> to vector<8x2xi32>
    %62 = arith.sitofp %61 : vector<8x2xi32> to vector<8x2xf32>
    %63 = arith.addf %57, %62 : vector<8x2xf32>
    %c2_i32 = arith.constant 2 : i32
    %64 = vector.broadcast %c2_i32 : i32 to vector<8x2xi32>
    %65 = arith.addi %56, %64 : vector<8x2xi32>
    %66 = arith.cmpi eq, %55, %65 : vector<8x2xi32>
    %67 = arith.extui %66 : vector<8x2xi1> to vector<8x2xi32>
    %68 = arith.sitofp %67 : vector<8x2xi32> to vector<8x2xf32>
    %69 = arith.addf %63, %68 : vector<8x2xf32>
    %c4_i32 = arith.constant 4 : i32
    %70 = vector.broadcast %c4_i32 : i32 to vector<8x2xi32>
    %71 = arith.addi %56, %70 : vector<8x2xi32>
    %72 = arith.cmpi eq, %55, %71 : vector<8x2xi32>
    %73 = arith.extui %72 : vector<8x2xi1> to vector<8x2xi32>
    %74 = arith.sitofp %73 : vector<8x2xi32> to vector<8x2xf32>
    %75 = arith.addf %69, %74 : vector<8x2xf32>
    %c6_i32 = arith.constant 6 : i32
    %76 = vector.broadcast %c6_i32 : i32 to vector<8x2xi32>
    %77 = arith.addi %56, %76 : vector<8x2xi32>
    %78 = arith.cmpi eq, %55, %77 : vector<8x2xi32>
    %79 = arith.extui %78 : vector<8x2xi1> to vector<8x2xi32>
    %80 = arith.sitofp %79 : vector<8x2xi32> to vector<8x2xf32>
    %81 = arith.addf %75, %80 : vector<8x2xf32>
    %cst_28 = arith.constant dense<0.000000e+00> : vector<8x32xf32>
    %82 = tpu.matmul %81, %53, %cst_28 {dimension_numbers = #tpu.dot_dimension_numbers<[1], [0], [0], [1], [0, 0, 1, 1], [], []>} : vector<8x2xf32>, vector<2x32xf32>, vector<8x32xf32> -> vector<8x32xf32>
    %83 = arith.truncf %82 : vector<8x32xf32> to vector<8x32xbf16>
    %c0_29 = arith.constant 0 : index
    %c0_30 = arith.constant 0 : index
    %84 = vector.load %arg4[%c0_29, %c0_30] : memref<32x1024xbf16, #tpu.memory_space<vmem>>, vector<32x1024xbf16>
    %cst_31 = arith.constant dense<0.000000e+00> : vector<8x1024xf32>
    %85 = tpu.matmul %83, %84, %cst_31 {dimension_numbers = #tpu.dot_dimension_numbers<[1], [0], [0], [1], [0, 0, 1, 1], [], []>} : vector<8x32xbf16>, vector<32x1024xbf16>, vector<8x1024xf32> -> vector<8x1024xf32>
    %86 = tpu.iota {dimensions = array<i32: 0>} : vector<8x1xi32>
    %cst_32 = arith.constant 0.000000e+00 : f32
    %87 = vector.broadcast %cst_32 : f32 to vector<8x256xf32>
    %c0_i32_33 = arith.constant 0 : i32
    %88 = vector.broadcast %c0_i32_33 : i32 to vector<8x1xi32>
    %89 = arith.cmpi sge, %86, %88 : vector<8x1xi32>
    %c2_i32_34 = arith.constant 2 : i32
    %90 = vector.broadcast %c2_i32_34 : i32 to vector<8x1xi32>
    %91 = arith.cmpi slt, %86, %90 : vector<8x1xi32>
    %92 = arith.andi %89, %91 : vector<8x1xi1>
    %93 = arith.extui %92 : vector<8x1xi1> to vector<8x1xi32>
    %94 = arith.sitofp %93 : vector<8x1xi32> to vector<8x1xf32>
    %95 = vector.extract_strided_slice %85 {offsets = [0, 0], sizes = [8, 256], strides = [1, 1]} : vector<8x1024xf32> to vector<8x256xf32>
    %c9 = arith.constant 9 : index
    %c0_35 = arith.constant 0 : index
    %96 = vector.load %arg6[%c9, %c0_35] : memref<13x512xf32, #tpu.memory_space<vmem>>, vector<1x256xf32>
    %97 = vector.broadcast %96 : vector<1x256xf32> to vector<8x256xf32>
    %98 = arith.addf %95, %97 : vector<8x256xf32>
    %99 = vector.broadcast %94 : vector<8x1xf32> to vector<8x256xf32>
    %100 = arith.mulf %99, %98 : vector<8x256xf32>
    %101 = arith.addf %87, %100 : vector<8x256xf32>
    %c2_i32_36 = arith.constant 2 : i32
    %102 = vector.broadcast %c2_i32_36 : i32 to vector<8x1xi32>
    %103 = arith.cmpi sge, %86, %102 : vector<8x1xi32>
    %c4_i32_37 = arith.constant 4 : i32
    %104 = vector.broadcast %c4_i32_37 : i32 to vector<8x1xi32>
    %105 = arith.cmpi slt, %86, %104 : vector<8x1xi32>
    %106 = arith.andi %103, %105 : vector<8x1xi1>
    %107 = arith.extui %106 : vector<8x1xi1> to vector<8x1xi32>
    %108 = arith.sitofp %107 : vector<8x1xi32> to vector<8x1xf32>
    %109 = vector.extract_strided_slice %85 {offsets = [0, 256], sizes = [8, 256], strides = [1, 1]} : vector<8x1024xf32> to vector<8x256xf32>
    %c10 = arith.constant 10 : index
    %c0_38 = arith.constant 0 : index
    %110 = vector.load %arg6[%c10, %c0_38] : memref<13x512xf32, #tpu.memory_space<vmem>>, vector<1x256xf32>
    %111 = vector.broadcast %110 : vector<1x256xf32> to vector<8x256xf32>
    %112 = arith.addf %109, %111 : vector<8x256xf32>
    %113 = vector.broadcast %108 : vector<8x1xf32> to vector<8x256xf32>
    %114 = arith.mulf %113, %112 : vector<8x256xf32>
    %115 = arith.addf %101, %114 : vector<8x256xf32>
    %c4_i32_39 = arith.constant 4 : i32
    %116 = vector.broadcast %c4_i32_39 : i32 to vector<8x1xi32>
    %117 = arith.cmpi sge, %86, %116 : vector<8x1xi32>
    %c6_i32_40 = arith.constant 6 : i32
    %118 = vector.broadcast %c6_i32_40 : i32 to vector<8x1xi32>
    %119 = arith.cmpi slt, %86, %118 : vector<8x1xi32>
    %120 = arith.andi %117, %119 : vector<8x1xi1>
    %121 = arith.extui %120 : vector<8x1xi1> to vector<8x1xi32>
    %122 = arith.sitofp %121 : vector<8x1xi32> to vector<8x1xf32>
    %123 = vector.extract_strided_slice %85 {offsets = [0, 512], sizes = [8, 256], strides = [1, 1]} : vector<8x1024xf32> to vector<8x256xf32>
    %c11 = arith.constant 11 : index
    %c0_41 = arith.constant 0 : index
    %124 = vector.load %arg6[%c11, %c0_41] : memref<13x512xf32, #tpu.memory_space<vmem>>, vector<1x256xf32>
    %125 = vector.broadcast %124 : vector<1x256xf32> to vector<8x256xf32>
    %126 = arith.addf %123, %125 : vector<8x256xf32>
    %127 = vector.broadcast %122 : vector<8x1xf32> to vector<8x256xf32>
    %128 = arith.mulf %127, %126 : vector<8x256xf32>
    %129 = arith.addf %115, %128 : vector<8x256xf32>
    %c6_i32_42 = arith.constant 6 : i32
    %130 = vector.broadcast %c6_i32_42 : i32 to vector<8x1xi32>
    %131 = arith.cmpi sge, %86, %130 : vector<8x1xi32>
    %c8_i32 = arith.constant 8 : i32
    %132 = vector.broadcast %c8_i32 : i32 to vector<8x1xi32>
    %133 = arith.cmpi slt, %86, %132 : vector<8x1xi32>
    %134 = arith.andi %131, %133 : vector<8x1xi1>
    %135 = arith.extui %134 : vector<8x1xi1> to vector<8x1xi32>
    %136 = arith.sitofp %135 : vector<8x1xi32> to vector<8x1xf32>
    %137 = vector.extract_strided_slice %85 {offsets = [0, 768], sizes = [8, 256], strides = [1, 1]} : vector<8x1024xf32> to vector<8x256xf32>
    %c12 = arith.constant 12 : index
    %c0_43 = arith.constant 0 : index
    %138 = vector.load %arg6[%c12, %c0_43] : memref<13x512xf32, #tpu.memory_space<vmem>>, vector<1x256xf32>
    %139 = vector.broadcast %138 : vector<1x256xf32> to vector<8x256xf32>
    %140 = arith.addf %137, %139 : vector<8x256xf32>
    %141 = vector.broadcast %136 : vector<8x1xf32> to vector<8x256xf32>
    %142 = arith.mulf %141, %140 : vector<8x256xf32>
    %143 = arith.addf %129, %142 : vector<8x256xf32>
    %c1280 = arith.constant 1280 : index
    %c0_44 = arith.constant 0 : index
    %144 = vector.load %arg2[%c1280, %c0_44] : memref<1792x256xbf16, #tpu.memory_space<vmem>>, vector<256x256xbf16>
    %c5 = arith.constant 5 : index
    %c0_45 = arith.constant 0 : index
    %145 = vector.load %arg6[%c5, %c0_45] : memref<13x512xf32, #tpu.memory_space<vmem>>, vector<1x256xf32>
    %146 = arith.truncf %143 : vector<8x256xf32> to vector<8x256xbf16>
    %cst_46 = arith.constant dense<0.000000e+00> : vector<8x256xf32>
    %147 = tpu.matmul %146, %144, %cst_46 {dimension_numbers = #tpu.dot_dimension_numbers<[1], [0], [0], [1], [0, 0, 1, 1], [], []>} : vector<8x256xbf16>, vector<256x256xbf16>, vector<8x256xf32> -> vector<8x256xf32>
    %148 = vector.broadcast %145 : vector<1x256xf32> to vector<8x256xf32>
    %149 = arith.addf %147, %148 : vector<8x256xf32>
    %cst_47 = arith.constant 0.000000e+00 : f32
    %150 = vector.broadcast %cst_47 : f32 to vector<8x256xf32>
    %151 = arith.maximumf %149, %150 : vector<8x256xf32>
    %c1536 = arith.constant 1536 : index
    %c0_48 = arith.constant 0 : index
    %152 = vector.load %arg2[%c1536, %c0_48] : memref<1792x256xbf16, #tpu.memory_space<vmem>>, vector<256x256xbf16>
    %c6 = arith.constant 6 : index
    %c0_49 = arith.constant 0 : index
    %153 = vector.load %arg6[%c6, %c0_49] : memref<13x512xf32, #tpu.memory_space<vmem>>, vector<1x256xf32>
    %154 = arith.truncf %151 : vector<8x256xf32> to vector<8x256xbf16>
    %cst_50 = arith.constant dense<0.000000e+00> : vector<8x256xf32>
    %155 = tpu.matmul %154, %152, %cst_50 {dimension_numbers = #tpu.dot_dimension_numbers<[1], [0], [0], [1], [0, 0, 1, 1], [], []>} : vector<8x256xbf16>, vector<256x256xbf16>, vector<8x256xf32> -> vector<8x256xf32>
    %156 = vector.broadcast %153 : vector<1x256xf32> to vector<8x256xf32>
    %157 = arith.addf %155, %156 : vector<8x256xf32>
    %cst_51 = arith.constant 0.000000e+00 : f32
    %158 = vector.broadcast %cst_51 : f32 to vector<8x256xf32>
    %159 = arith.maximumf %157, %158 : vector<8x256xf32>
    %c64 = arith.constant 64 : index
    %c0_52 = arith.constant 0 : index
    %160 = vector.load %arg3[%c64, %c0_52] : memref<320x512xbf16, #tpu.memory_space<vmem>>, vector<256x512xbf16>
    %c7 = arith.constant 7 : index
    %c0_53 = arith.constant 0 : index
    %161 = vector.load %arg6[%c7, %c0_53] : memref<13x512xf32, #tpu.memory_space<vmem>>, vector<1x512xf32>
    %162 = arith.truncf %159 : vector<8x256xf32> to vector<8x256xbf16>
    %cst_54 = arith.constant dense<0.000000e+00> : vector<8x512xf32>
    %163 = tpu.matmul %162, %160, %cst_54 {dimension_numbers = #tpu.dot_dimension_numbers<[1], [0], [0], [1], [0, 0, 1, 1], [], []>} : vector<8x256xbf16>, vector<256x512xbf16>, vector<8x512xf32> -> vector<8x512xf32>
    %164 = vector.broadcast %161 : vector<1x512xf32> to vector<8x512xf32>
    %165 = arith.addf %163, %164 : vector<8x512xf32>
    %cst_55 = arith.constant 0.000000e+00 : f32
    %166 = vector.broadcast %cst_55 : f32 to vector<8x512xf32>
    %167 = arith.maximumf %165, %166 : vector<8x512xf32>
    %c0_56 = arith.constant 0 : index
    %c0_57 = arith.constant 0 : index
    %168 = vector.load %arg5[%c0_56, %c0_57] : memref<512x64xbf16, #tpu.memory_space<vmem>>, vector<512x64xbf16>
    %c8 = arith.constant 8 : index
    %c0_58 = arith.constant 0 : index
    %169 = vector.load %arg6[%c8, %c0_58] : memref<13x512xf32, #tpu.memory_space<vmem>>, vector<1x64xf32>
    %170 = arith.truncf %167 : vector<8x512xf32> to vector<8x512xbf16>
    %cst_59 = arith.constant dense<0.000000e+00> : vector<8x64xf32>
    %171 = tpu.matmul %170, %168, %cst_59 {dimension_numbers = #tpu.dot_dimension_numbers<[1], [0], [0], [1], [0, 0, 1, 1], [], []>} : vector<8x512xbf16>, vector<512x64xbf16>, vector<8x64xf32> -> vector<8x64xf32>
    %172 = vector.broadcast %169 : vector<1x64xf32> to vector<8x64xf32>
    %173 = arith.addf %171, %172 : vector<8x64xf32>
    %174 = arith.negf %173 : vector<8x64xf32>
    %175 = math.exp %174 : vector<8x64xf32>
    %cst_60 = arith.constant 1.000000e+00 : f32
    %176 = vector.broadcast %cst_60 : f32 to vector<8x64xf32>
    %177 = arith.addf %176, %175 : vector<8x64xf32>
    %178 = arith.divf %176, %177 : vector<8x64xf32>
    %c0_61 = arith.constant 0 : index
    %c0_62 = arith.constant 0 : index
    %179 = vector.load %arg7[%c0_61, %c0_62] : memref<8x64xf32, #tpu.memory_space<vmem>>, vector<8x64xf32>
    tpu.vector_store %arg7[%c0_61, %c0_62], %178 {strides = array<i32>} : memref<8x64xf32, #tpu.memory_space<vmem>>, vector<8x64xf32>,
    return
  }
}

</mosaic_0001>

<bundles_post_ra>
// kernel: vae1d_forward.1
= control target key start
LH: loop header
LB: loop body
LE: loop exit
PB: predicated region body
PF: predicated region fallthrough
CT: control target
= control target key end

     0   :  { %14 = vsyncpa [#allocation3], 0  ;;  %s4682_s0 = inlined_call_operand.vmem [shape: f32[8,64], index: 0, kind: input, shape index: {}]   ;;  %s4683_s1 = inlined_call_operand.vmem [shape: f32[2,32], index: 1, kind: input, shape index: {}]   ;;  %s4684_s2 = inlined_call_operand.hbm [shape: bf16[1792,256], index: 2, kind: input, shape index: {}]   ;;  %s4685_s3 = inlined_call_operand.hbm [shape: bf16[320,512], index: 3, kind: input, shape index: {}]   ;;  %s4686_s4 = inlined_call_operand.vmem [shape: bf16[32,1024], index: 4, kind: input, shape index: {}]   ;;  %s4687_s5 = inlined_call_operand.vmem [shape: bf16[512,64], index: 5, kind: input, shape index: {}]   ;;  %s4688_s6 = inlined_call_operand.vmem [shape: f32[13,512], index: 6, kind: input, shape index: {}]   ;;  %s4689_s7 = inlined_call_operand.vmem [shape: f32[8,64], index: 7, kind: output, shape index: {0}]   ;;  %s4690_s8 = inlined_call_operand.vmem [shape: f32[2,64], index: 8, kind: output, shape index: {1}]  }
   0x1   :  { %15 = vsyncpa [#allocation5], 0  ;;  %s4325_s27 = smov [#allocation2]   ;;  %s4277_s9 = scalar_lea.hbm %s4684_s2, 28672 }
   0x2   :  { %s25_s28 = sshll.u32 %s4325_s27, 4  ;;  %p4278_p0 = scmp.ne.s32.totalorder %s4684_s2, %s4277_s9  ;;  %s26_s28 = int_to_ptr.vmem [resolvable:$true] %s25_s28 }
   0x3   :  { %p4281_p1 = scmp.lt.u32.totalorder %s4277_s9, %s4684_s2 }
   0x5   :  { %p4283_p2 = pnand %p4281_p1, %p4278_p0 }
   0x7   :  { %4286 = shalt.err (!%p4283_p2)
}
   0x8   :  { %s4287_s14 = scalar_lea.vmem %s26_s28, 28672  ;;  %p4292_p4 = scmp.lt.s32.totalorder %s26_s28, %s26_s28 }
   0x9   :  { %p4288_p3 = scmp.ne.s32.totalorder %s26_s28, %s4287_s14  ;;  %p4293_p5 = scmp.lt.s32.totalorder %s4287_s14, %s4287_s14 }
   0xb   :  { %p4294_p6 = por %p4293_p5, %p4292_p4 }
   0xd   :  { %p4295_p7 = pnand %p4294_p6, %p4288_p3 }
   0xf   :  { %4298 = shalt.err (!%p4295_p7)
}
  0x10   :  { %s4326_s15 = smov 128   ;;  %s4327_s16 = smov 8  }
  0x11   :  { %31 = dma.hbm_to_vmem [thread:$0]  %s4684_s2, 28672, %s26_s28, [#allocation3], %s4326_s15, %s4326_s15, %s4327_s16  }
  0x12   :  { %s4328_s19 = smov [#allocation4]   ;;  %s4299_s23 = scalar_lea.hbm %s4685_s3, 10240 }
  0x13   :  { %s37_s20 = sshll.u32 %s4328_s19, 4  ;;  %p4300_p8 = scmp.ne.s32.totalorder %s4685_s3, %s4299_s23  ;;  %s38_s20 = int_to_ptr.vmem [resolvable:$true] %s37_s20 }
  0x14   :  { %p4303_p9 = scmp.lt.u32.totalorder %s4299_s23, %s4685_s3 }
  0x16   :  { %p4305_p10 = pnand %p4303_p9, %p4300_p8 }
  0x18   :  { %4308 = shalt.err (!%p4305_p10)
}
  0x19   :  { %s4309_s29 = scalar_lea.vmem %s38_s20, 10240  ;;  %p4314_p12 = scmp.lt.s32.totalorder %s38_s20, %s38_s20 }
  0x1a   :  { %p4310_p11 = scmp.ne.s32.totalorder %s38_s20, %s4309_s29  ;;  %p4315_p13 = scmp.lt.s32.totalorder %s4309_s29, %s4309_s29 }
  0x1c   :  { %p4316_p0 = por %p4315_p13, %p4314_p12 }
  0x1e   :  { %p4317_p1 = pnand %p4316_p0, %p4310_p11 }
  0x20   :  { %4320 = shalt.err (!%p4317_p1)
}
  0x21   :  { %s4329_s2 = smov 256   ;;  %s4330_s28 = smov 16  }
  0x22   :  { %43 = dma.hbm_to_vmem [thread:$0]  %s4685_s3, 10240, %s38_s20, [#allocation5], %s4329_s2, %s4329_s2, %s4330_s28  }
  0x23   :  { %4321 = dma.done.wait [#allocation3], 28672  }
  0x24   :  { %4322 = vsyncadd [#allocation3], 4294938624 }
  0x25   :  { %4323 = dma.done.wait [#allocation5], 10240  }
  0x26   :  { %4324 = vsyncadd [#allocation5], 4294957056  ;;  %v4331_v0 = vmov 0   ;;  %v3783_v1 = vld [vmem:[#allocation4 + $0x4] ss:$16 sps:$4 sm:$0xff]   ;;  %v57_v9 = vld [vmem:[%s4682_s0] sm:$0xff] }
  0x27   :  { %213 = vmatprep.mubr.bf16.mxu1 %v4331_v0  ;;  %v3785_v2 = vld [vmem:[#allocation4] ss:$16 sps:$4 sm:$0xff]   ;;  %181 = vmatprep.subr.bf16.mxu1 %v3783_v1  ;;  %v3786_v3 = vld [vmem:[#allocation4 + $0x24] ss:$16 sps:$4 sm:$0xff]   ;;  %v3797_v10 = vld [vmem:[#allocation4 + $0xc] ss:$16 sps:$4 sm:$0xff]   ;;  %v75_v14 = vpack.c.bf16 %v57_v9, %v57_v9 }
  0x28   :  { %182 = vmatpush1.bf16.msra.mxu1 %v3785_v2  ;;  %v3788_v4 = vld [vmem:[#allocation4 + $0x20] ss:$16 sps:$4 sm:$0xff]   ;;  %v3789_v5 = vld [vmem:[#allocation4 + $0x44] ss:$16 sps:$4 sm:$0xff]   ;;  %v3795_v15 = vld [vmem:[#allocation4 + $0x8] ss:$16 sps:$4 sm:$0xff]  }
  0x29   :  { %183 = vmatprep.subr.bf16.mxu1 %v3786_v3  ;;  %v3791_v6 = vld [vmem:[#allocation4 + $0x40] ss:$16 sps:$4 sm:$0xff]   ;;  %v3792_v7 = vld [vmem:[#allocation4 + $0x64] ss:$16 sps:$4 sm:$0xff]   ;;  %vm177_vm0 = vcmask 523264   ;;  %s4332_s20 = smov 32  }
  0x2a   :  { %v3794_v8 = vld [vmem:[#allocation4 + $0x60] ss:$16 sps:$4 sm:$0xff]   ;;  %v3807_v11 = vld [vmem:[#allocation2 + $0x4] ss:$8 sps:$4 sm:$0xff]   ;;  %v3810_v13 = vld [vmem:[#allocation2 + $0x14] ss:$8 sps:$4 sm:$0xff]  }
  0x2b   :  { %v3809_v12 = vld [vmem:[#allocation2] ss:$8 sps:$4 sm:$0xff]   ;;  %668 = vmatprep.subr.bf16.mxu0 %v3807_v11  ;;  %v3812_v16 = vld [vmem:[#allocation2 + $0x10] ss:$8 sps:$4 sm:$0xff]   ;;  %v3800_v17 = vld [vmem:[#allocation4 + $0x2c] ss:$16 sps:$4 sm:$0xff]   ;;  %v77_v11 = vlaneseq }
  0x2c   :  { %184 = vmatpush1.bf16.msra.mxu1 %v3788_v4  ;;  %669 = vmatpush1.bf16.msra.mxu0 %v3809_v12  ;;  %v3813_v18 = vld [vmem:[#allocation2 + $0x24] ss:$8 sps:$4 sm:$0xff]   ;;  %v3798_v19 = vld [vmem:[#allocation4 + $0x28] ss:$16 sps:$4 sm:$0xff]   ;;  %v3816_v21 = vld [vmem:[#allocation2 + $0x34] ss:$8 sps:$4 sm:$0xff]  }
  0x2d   :  { %185 = vmatprep.subr.bf16.mxu1 %v3789_v5  ;;  %670 = vmatprep.subr.bf16.mxu0 %v3810_v13  ;;  %v3815_v20 = vld [vmem:[#allocation2 + $0x20] ss:$8 sps:$4 sm:$0xff]   ;;  %v3803_v22 = vld [vmem:[#allocation4 + $0x4c] ss:$16 sps:$4 sm:$0xff]   ;;  %v3818_v24 = vld [vmem:[#allocation2 + $0x30] ss:$8 sps:$4 sm:$0xff]  }
  0x2e   :  { %v3801_v23 = vld [vmem:[#allocation4 + $0x48] ss:$16 sps:$4 sm:$0xff]   ;;  %v3819_v25 = vld [vmem:[#allocation2 + $0x44] ss:$8 sps:$4 sm:$0xff]   ;;  %v3822_v29 = vld [vmem:[#allocation2 + $0x54] ss:$8 sps:$4 sm:$0xff]  }
  0x2f   :  { %v3806_v26 = vld [vmem:[#allocation4 + $0x6c] ss:$16 sps:$4 sm:$0xff]   ;;  %v3804_v27 = vld [vmem:[#allocation4 + $0x68] ss:$16 sps:$4 sm:$0xff]   ;;  %s4333_s21 = smov 64   ;;  %vm1518_vm1 = vcmask 517120  }
  0x30   :  { %186 = vmatpush1.bf16.msra.mxu1 %v3791_v6  ;;  %671 = vmatpush1.bf16.msra.mxu0 %v3812_v16  ;;  %v3821_v28 = vld [vmem:[#allocation2 + $0x40] ss:$8 sps:$4 sm:$0xff]   ;;  %v3824_v30 = vld [vmem:[#allocation2 + $0x50] ss:$8 sps:$4 sm:$0xff]   ;;  %v3825_v31 = vld [vmem:[#allocation2 + $0x64] ss:$8 sps:$4 sm:$0xff]  }
  0x31   :  { %187 = vmatprep.subr.bf16.mxu1 %v3792_v7  ;;  %672 = vmatprep.subr.bf16.mxu0 %v3813_v18  ;;  %v3827_v32 = vld [vmem:[#allocation2 + $0x60] ss:$8 sps:$4 sm:$0xff]   ;;  %v3828_v33 = vld [vmem:[#allocation2 + $0x74] ss:$8 sps:$4 sm:$0xff]   ;;  %v3830_v34 = vld [vmem:[#allocation2 + $0x70] ss:$8 sps:$4 sm:$0xff]  }
  0x32   :  { %v3831_v35 = vld [vmem:[#allocation2 + $0x84] ss:$8 sps:$4 sm:$0xff]   ;;  %v3833_v36 = vld [vmem:[#allocation2 + $0x80] ss:$8 sps:$4 sm:$0xff]   ;;  %v3834_v37 = vld [vmem:[#allocation2 + $0x94] ss:$8 sps:$4 sm:$0xff]  }
  0x33   :  { %v3836_v38 = vld [vmem:[#allocation2 + $0x90] ss:$8 sps:$4 sm:$0xff]   ;;  %v3837_v39 = vld [vmem:[#allocation2 + $0xa4] ss:$8 sps:$4 sm:$0xff]   ;;  %v3839_v40 = vld [vmem:[#allocation2 + $0xa0] ss:$8 sps:$4 sm:$0xff]  }
  0x34   :  { %188 = vmatpush1.bf16.msra.mxu1 %v3794_v8  ;;  %673 = vmatpush1.bf16.msra.mxu0 %v3815_v20  ;;  %v3840_v41 = vld [vmem:[#allocation2 + $0xb4] ss:$8 sps:$4 sm:$0xff]   ;;  %v3842_v42 = vld [vmem:[#allocation2 + $0xb0] ss:$8 sps:$4 sm:$0xff]   ;;  %v3843_v43 = vld [vmem:[#allocation2 + $0xc4] ss:$8 sps:$4 sm:$0xff]  }
  0x35   :  { %222 = vmatprep.subr.bf16.mxu1 %v3797_v10  ;;  %674 = vmatprep.subr.bf16.mxu0 %v3816_v21  ;;  %v3845_v44 = vld [vmem:[#allocation2 + $0xc0] ss:$8 sps:$4 sm:$0xff]   ;;  %v3846_v45 = vld [vmem:[#allocation2 + $0xd4] ss:$8 sps:$4 sm:$0xff]   ;;  %v3848_v46 = vld [vmem:[#allocation2 + $0xd0] ss:$8 sps:$4 sm:$0xff]  }
  0x36   :  { %v3849_v47 = vld [vmem:[#allocation2 + $0xe4] ss:$8 sps:$4 sm:$0xff]   ;;  %v3851_v48 = vld [vmem:[#allocation2 + $0xe0] ss:$8 sps:$4 sm:$0xff]   ;;  %v3852_v49 = vld [vmem:[#allocation2 + $0xf4] ss:$8 sps:$4 sm:$0xff]  }
  0x37   :  { %3351 = vmatmul.mubr.msk.bf16.vlgmr.msra.gmra.mrb[0].mxu1 %vm177_vm0, %v75_v14  ;;  %v3854_v50 = vld [vmem:[#allocation2 + $0xf0] ss:$8 sps:$4 sm:$0xff]   ;;  %v3857_v51 = vld [vmem:[#allocation2 + $0x104] ss:$8 sps:$4 sm:$0xff]   ;;  %v3903_v52 = vld [vmem:[#allocation2 + $0x200] ss:$8 sps:$4 sm:$0xff]  }
  0x38   :  { %223 = vmatpush1.bf16.msra.mxu1 %v3795_v15  ;;  %254 = vmatprep.mubr.bf16.mxu1 %v4331_v0  ;;  %v3905_v53 = vld [vmem:[#allocation2 + $0x204] ss:$8 sps:$4 sm:$0xff]   ;;  %v3908_v54 = vld [vmem:[#allocation2 + $0x214] ss:$8 sps:$4 sm:$0xff]   ;;  %v3906_v55 = vld [vmem:[#allocation2 + $0x210] ss:$8 sps:$4 sm:$0xff]  }
  0x39   :  { %224 = vmatprep.subr.bf16.mxu1 %v3800_v17  ;;  %675 = vmatpush1.bf16.msra.mxu0 %v3818_v24  ;;  %v3911_v56 = vld [vmem:[#allocation2 + $0x224] ss:$8 sps:$4 sm:$0xff]   ;;  %v3909_v57 = vld [vmem:[#allocation2 + $0x220] ss:$8 sps:$4 sm:$0xff]   ;;  %v3914_v58 = vld [vmem:[#allocation2 + $0x234] ss:$8 sps:$4 sm:$0xff]  }
  0x3a   :  { %676 = vmatprep.subr.bf16.mxu0 %v3819_v25  ;;  %v3912_v59 = vld [vmem:[#allocation2 + $0x230] ss:$8 sps:$4 sm:$0xff]   ;;  %v3917_v60 = vld [vmem:[#allocation2 + $0x244] ss:$8 sps:$4 sm:$0xff]   ;;  %v3915_v61 = vld [vmem:[#allocation2 + $0x240] ss:$8 sps:$4 sm:$0xff]  }
  0x3b   :  { %v3920_v62 = vld [vmem:[#allocation2 + $0x254] ss:$8 sps:$4 sm:$0xff]   ;;  %v3918_v63 = vld [vmem:[#allocation2 + $0x250] ss:$8 sps:$4 sm:$0xff]   ;;  %v3923_v1 = vld [vmem:[#allocation2 + $0x264] ss:$8 sps:$4 sm:$0xff]  }
  0x3c   :  { %225 = vmatpush1.bf16.msra.mxu1 %v3798_v19  ;;  %v3921_v2 = vld [vmem:[#allocation2 + $0x260] ss:$8 sps:$4 sm:$0xff]   ;;  %v3926_v3 = vld [vmem:[#allocation2 + $0x274] ss:$8 sps:$4 sm:$0xff]   ;;  %v3924_v4 = vld [vmem:[#allocation2 + $0x270] ss:$8 sps:$4 sm:$0xff]  }
  0x3d   :  { %226 = vmatprep.subr.bf16.mxu1 %v3803_v22  ;;  %677 = vmatpush1.bf16.msra.mxu0 %v3821_v28  ;;  %v3929_v5 = vld [vmem:[#allocation2 + $0x284] ss:$8 sps:$4 sm:$0xff]   ;;  %v3927_v6 = vld [vmem:[#allocation2 + $0x280] ss:$8 sps:$4 sm:$0xff]   ;;  %v3932_v7 = vld [vmem:[#allocation2 + $0x294] ss:$8 sps:$4 sm:$0xff]  }
  0x3e   :  { %678 = vmatprep.subr.bf16.mxu0 %v3822_v29  ;;  %v3930_v8 = vld [vmem:[#allocation2 + $0x290] ss:$8 sps:$4 sm:$0xff]   ;;  %v3935_v9 = vld [vmem:[#allocation2 + $0x2a4] ss:$8 sps:$4 sm:$0xff]   ;;  %v3933_v10 = vld [vmem:[#allocation2 + $0x2a0] ss:$8 sps:$4 sm:$0xff]  }
  0x3f   :  { %v3938_v12 = vld [vmem:[#allocation2 + $0x2b4] ss:$8 sps:$4 sm:$0xff]   ;;  %v3936_v13 = vld [vmem:[#allocation2 + $0x2b0] ss:$8 sps:$4 sm:$0xff]   ;;  %v3941_v15 = vld [vmem:[#allocation2 + $0x2c4] ss:$8 sps:$4 sm:$0xff]  }
  0x40   :  { %227 = vmatpush1.bf16.msra.mxu1 %v3801_v23  ;;  %v3939_v16 = vld [vmem:[#allocation2 + $0x2c0] ss:$8 sps:$4 sm:$0xff]   ;;  %v3944_v18 = vld [vmem:[#allocation2 + $0x2d4] ss:$8 sps:$4 sm:$0xff]   ;;  %v3942_v21 = vld [vmem:[#allocation2 + $0x2d0] ss:$8 sps:$4 sm:$0xff]  }
  0x41   :  { %228 = vmatprep.subr.bf16.mxu1 %v3806_v26  ;;  %679 = vmatpush1.bf16.msra.mxu0 %v3824_v30  ;;  %v4422_v19 = vld [vmem:[%s4688_s6] ss:$8 sm:$0xf]  ;;  %vm4335_vm2 = vmmov 0   ;;  %s4336_s25 = smov 96   ;;  %vm1547_vm7 = vcmask 1041408  }
  0x42   :  { %680 = vmatprep.subr.bf16.mxu0 %v3825_v31  ;;  %vm1543_vm8 = vcmask 15360   ;;  %vm1718_vm9 = vcmask 261120  }
  0x44   :  { %229 = vmatpush1.bf16.msra.mxu1 %v3804_v27 }
  0x45   :  { %681 = vmatpush1.bf16.msra.mxu0 %v3827_v32  ;;  %959 = vmatprep.subr.bf16.mxu1 %v3905_v53  ;;  %v3870_v53 = vld [vmem:[#allocation2 + $0x150] ss:$8 sps:$4 sm:$0xff]  }
  0x46   :  { %682 = vmatprep.subr.bf16.mxu0 %v3828_v33  ;;  %v3855_v33 = vld [vmem:[#allocation2 + $0x100] ss:$8 sps:$4 sm:$0xff]  }
  0x47   :  { %3352 = vmatmul.mubr.msk.bf16.vlgmr.msra.gmra.mrb[4].mxu1 %vm177_vm0, %v75_v14  ;;  %v4414_v14 = vshrl.u32 %v77_v11, 7 }
  0x48   :  { %960 = vmatpush1.bf16.msra.mxu1 %v3903_v52  ;;  %v3872_v52 = vld [vmem:[#allocation2 + $0x154] ss:$8 sps:$4 sm:$0xff]  }
  0x49   :  { %683 = vmatpush1.bf16.msra.mxu0 %v3830_v34  ;;  %961 = vmatprep.subr.bf16.mxu1 %v3908_v54  ;;  %v4417_v17 = vsub.s32 0, %v4414_v14  ;;  %v4425_v20 = vsub.s32 1, %v4414_v14  ;;  %v3875_v54 = vld [vmem:[#allocation2 + $0x164] ss:$8 sps:$4 sm:$0xff]   ;;  %vm1910_vm10 = vcmp.ge.s32.totalorder %v4414_v14, 2  ;;  %vm1911_vm11 = vcmp.lt.s32.totalorder %v4414_v14, 4 }
  0x4a   :  { %684 = vmatprep.subr.bf16.mxu0 %v3831_v35  ;;  %v3860_v35 = vld [vmem:[#allocation2 + $0x114] ss:$8 sps:$4 sm:$0xff]   ;;  %vm1887_vm12 = vcmp.lt.s32.totalorder %v4414_v14, 2  ;;  %vm1912_vm13 = vmand %vm1910_vm10, %vm1911_vm11  ;;  %vm1934_vm14 = vcmp.ge.s32.totalorder %v4414_v14, 4  ;;  %vm1935_vm15 = vcmp.lt.s32.totalorder %v4414_v14, 6 }
  0x4b   :  { %v80_v22 = vrot.slane %v4422_v19, %v4417_v17  ;;  %v84_v23 = vrot.slane %v4422_v19, %v4425_v20 }
  0x4c   :  { %962 = vmatpush1.bf16.msra.mxu1 %v3906_v55  ;;  %v3873_v55 = vld [vmem:[#allocation2 + $0x160] ss:$8 sps:$4 sm:$0xff]  }
  0x4d   :  { %685 = vmatpush1.bf16.msra.mxu0 %v3833_v36  ;;  %963 = vmatprep.subr.bf16.mxu1 %v3911_v56  ;;  %v3858_v36 = vld [vmem:[#allocation2 + $0x110] ss:$8 sps:$4 sm:$0xff]   ;;  %v3878_v56 = vld [vmem:[#allocation2 + $0x174] ss:$8 sps:$4 sm:$0xff]  }
  0x4e   :  { %686 = vmatprep.subr.bf16.mxu0 %v3834_v37  ;;  %v91_v37 = vsub.s32 3, %v4414_v14 }
  0x50   :  { %964 = vmatpush1.bf16.msra.mxu1 %v3909_v57  ;;  %v3876_v57 = vld [vmem:[#allocation2 + $0x170] ss:$8 sps:$4 sm:$0xff]  }
  0x51   :  { %687 = vmatpush1.bf16.msra.mxu0 %v3836_v38  ;;  %965 = vmatprep.subr.bf16.mxu1 %v3914_v58  ;;  %v3863_v38 = vld [vmem:[#allocation2 + $0x124] ss:$8 sps:$4 sm:$0xff]  }
  0x52   :  { %688 = vmatprep.subr.bf16.mxu0 %v3837_v39  ;;  %v3861_v39 = vld [vmem:[#allocation2 + $0x120] ss:$8 sps:$4 sm:$0xff]   ;;  %v3881_v58 = vld [vmem:[#allocation2 + $0x184] ss:$8 sps:$4 sm:$0xff]  }
  0x54   :  { %966 = vmatpush1.bf16.msra.mxu1 %v3912_v59  ;;  %v3879_v59 = vld [vmem:[#allocation2 + $0x180] ss:$8 sps:$4 sm:$0xff]  }
  0x55   :  { %689 = vmatpush1.bf16.msra.mxu0 %v3839_v40  ;;  %967 = vmatprep.subr.bf16.mxu1 %v3917_v60  ;;  %v92_v40 = vrot.slane %v4422_v19, %v91_v37  ;;  %v3884_v60 = vld [vmem:[#allocation2 + $0x194] ss:$8 sps:$4 sm:$0xff]  }
  0x56   :  { %690 = vmatprep.subr.bf16.mxu0 %v3840_v41  ;;  %v3866_v41 = vld [vmem:[#allocation2 + $0x134] ss:$8 sps:$4 sm:$0xff]  }
  0x58   :  { %968 = vmatpush1.bf16.msra.mxu1 %v3915_v61  ;;  %v3882_v61 = vld [vmem:[#allocation2 + $0x190] ss:$8 sps:$4 sm:$0xff]  }
  0x59   :  { %691 = vmatpush1.bf16.msra.mxu0 %v3842_v42  ;;  %969 = vmatprep.subr.bf16.mxu1 %v3920_v62  ;;  %v3887_v62 = vld [vmem:[#allocation2 + $0x1a4] ss:$8 sps:$4 sm:$0xff]  }
  0x5a   :  { %692 = vmatprep.subr.bf16.mxu0 %v3843_v43 }
  0x5c   :  { %970 = vmatpush1.bf16.msra.mxu1 %v3918_v63  ;;  %v3885_v63 = vld [vmem:[#allocation2 + $0x1a0] ss:$8 sps:$4 sm:$0xff]  }
  0x5d   :  { %693 = vmatpush1.bf16.msra.mxu0 %v3845_v44  ;;  %971 = vmatprep.subr.bf16.mxu1 %v3923_v1  ;;  %v3864_v44 = vld [vmem:[#allocation2 + $0x130] ss:$8 sps:$4 sm:$0xff]   ;;  %v3890_v1 = vld [vmem:[#allocation2 + $0x1b4] ss:$8 sps:$4 sm:$0xff]  }
  0x5e   :  { %694 = vmatprep.subr.bf16.mxu0 %v3846_v45 }
  0x60   :  { %972 = vmatpush1.bf16.msra.mxu1 %v3921_v2  ;;  %v3888_v2 = vld [vmem:[#allocation2 + $0x1b0] ss:$8 sps:$4 sm:$0xff]  }
  0x61   :  { %695 = vmatpush1.bf16.msra.mxu0 %v3848_v46  ;;  %973 = vmatprep.subr.bf16.mxu1 %v3926_v3  ;;  %v3893_v3 = vld [vmem:[#allocation2 + $0x1c4] ss:$8 sps:$4 sm:$0xff]  }
  0x62   :  { %696 = vmatprep.subr.bf16.mxu0 %v3849_v47  ;;  %v3869_v47 = vld [vmem:[#allocation2 + $0x144] ss:$8 sps:$4 sm:$0xff]  }
  0x64   :  { %974 = vmatpush1.bf16.msra.mxu1 %v3924_v4  ;;  %v3891_v4 = vld [vmem:[#allocation2 + $0x1c0] ss:$8 sps:$4 sm:$0xff]  }
  0x65   :  { %697 = vmatpush1.bf16.msra.mxu0 %v3851_v48  ;;  %975 = vmatprep.subr.bf16.mxu1 %v3929_v5  ;;  %v87_v5 = vsub.s32 2, %v4414_v14 }
  0x66   :  { %698 = vmatprep.subr.bf16.mxu0 %v3852_v49 }
  0x68   :  { %976 = vmatpush1.bf16.msra.mxu1 %v3927_v6  ;;  %v3896_v6 = vld [vmem:[#allocation2 + $0x1d4] ss:$8 sps:$4 sm:$0xff]  }
  0x69   :  { %699 = vmatpush1.bf16.msra.mxu0 %v3854_v50  ;;  %977 = vmatprep.subr.bf16.mxu1 %v3932_v7  ;;  %v3867_v50 = vld [vmem:[#allocation2 + $0x140] ss:$8 sps:$4 sm:$0xff]   ;;  %v3894_v7 = vld [vmem:[#allocation2 + $0x1d0] ss:$8 sps:$4 sm:$0xff]  }
  0x6a   :  { %709 = vmatprep.subr.bf16.mxu0 %v3857_v51 }
  0x6c   :  { %978 = vmatpush1.bf16.msra.mxu1 %v3930_v8  ;;  %v88_v8 = vrot.slane %v4422_v19, %v87_v5  ;;  %v3948_v19 = vld [vmem:[#allocation2 + $0x2f0] ss:$8 sps:$4 sm:$0xff]  }
  0x6d   :  { %979 = vmatprep.subr.bf16.mxu1 %v3935_v9  ;;  %v3899_v9 = vld [vmem:[#allocation2 + $0x1e4] ss:$8 sps:$4 sm:$0xff]  }
  0x70   :  { %980 = vmatpush1.bf16.msra.mxu1 %v3933_v10  ;;  %v3897_v10 = vld [vmem:[#allocation2 + $0x1e0] ss:$8 sps:$4 sm:$0xff]  }
  0x71   :  { %981 = vmatprep.subr.bf16.mxu1 %v3938_v12 }
  0x74   :  { %982 = vmatpush1.bf16.msra.mxu1 %v3936_v13  ;;  %v3902_v13 = vld [vmem:[#allocation2 + $0x1f4] ss:$8 sps:$4 sm:$0xff]  }
  0x75   :  { %983 = vmatprep.subr.bf16.mxu1 %v3941_v15  ;;  %v3900_v15 = vld [vmem:[#allocation2 + $0x1f0] ss:$8 sps:$4 sm:$0xff]  }
  0x78   :  { %984 = vmatpush1.bf16.msra.mxu1 %v3939_v16 }
  0x79   :  { %985 = vmatprep.subr.bf16.mxu1 %v3944_v18 }
  0x7c   :  { %986 = vmatpush1.bf16.msra.mxu1 %v3942_v21  ;;  %v3947_v21 = vld [vmem:[#allocation2 + $0x2e4] ss:$8 sps:$4 sm:$0xff]  }
  0x7d   :  { %987 = vmatprep.subr.bf16.mxu1 %v3947_v21  ;;  %v4013_v21 = vld [vmem:[#allocation2 + $0x444] ss:$8 sps:$4 sm:$0xff]  }
 0x10a   :  { %v215_v24 = vpop.f32.mrb[0].mxu1 }
 0x10b   :  { %v216_v25 = vadd.f32 %v215_v24, %v80_v22  ;;  %v217_v26 = vpop.f32.mrb[1].mxu1  ;;  %v3945_v22 = vld [vmem:[#allocation2 + $0x2e0] ss:$8 sps:$4 sm:$0xff]   ;;  %v3953_v24 = vld [vmem:[#allocation2 + $0x304] ss:$8 sps:$4 sm:$0xff]  }
 0x10c   :  { %v218_v27 = vadd.f32 %v217_v26, %v84_v23  ;;  %v219_v28 = vpop.f32.mrb[2].mxu1  ;;  %988 = vmatpush1.bf16.msra.mxu1 %v3945_v22  ;;  %v3950_v23 = vld [vmem:[#allocation2 + $0x2f4] ss:$8 sps:$4 sm:$0xff]   ;;  %v4011_v22 = vld [vmem:[#allocation2 + $0x440] ss:$8 sps:$4 sm:$0xff]  }
 0x10d   :  { %v263_v29 = vmax.f32 %v216_v25, 0.0  ;;  %v220_v30 = vpop.f32.mrb[3].mxu1  ;;  %989 = vmatprep.subr.bf16.mxu1 %v3950_v23  ;;  %v3353_v25 = vld [vmem:[%s4688_s6 + $0x1] ss:$8 sm:$0x3] }
 0x10e   :  { %v264_v31 = vmax.f32 %v218_v27, 0.0  ;;  %v341_v26 = vrot.slane %v3353_v25, %v4417_v17  ;;  %v345_v27 = vrot.slane %v3353_v25, %v4425_v20  ;;  %v4016_v23 = vld [vmem:[#allocation2 + $0x454] ss:$8 sps:$4 sm:$0xff]   ;;  %v4017_v25 = vld [vmem:[#allocation2 + $0x460] ss:$8 sps:$4 sm:$0xff]  }
 0x10f   :  { %v333_v34 = vpack.c.bf16 %v263_v29, %v263_v29 }
 0x110   :  { %v334_v32 = vpack.c.bf16 %v264_v31, %v264_v31  ;;  %990 = vmatpush1.bf16.msra.mxu1 %v3948_v19  ;;  %v4014_v19 = vld [vmem:[#allocation2 + $0x450] ss:$8 sps:$4 sm:$0xff]  }
 0x111   :  { %1209 = vmatprep.subr.bf16.mxu1 %v3953_v24  ;;  %v4019_v24 = vld [vmem:[#allocation2 + $0x464] ss:$8 sps:$4 sm:$0xff]  }
 0x112   :  { %700 = vmatprep.mubr.bf16.mxu0 %v334_v32 }
 0x113   :  { %701 = vmatmul.mubr.bf16.vlgmr.msra.gmra.mrb[0].mxu0 %v333_v34 }
 0x114   :  { %710 = vmatpush1.bf16.msra.mxu0 %v3855_v33 }
 0x115   :  { %711 = vmatprep.subr.bf16.mxu0 %v3860_v35 }
 0x118   :  { %712 = vmatpush1.bf16.msra.mxu0 %v3858_v36 }
 0x119   :  { %713 = vmatprep.subr.bf16.mxu0 %v3863_v38  ;;  %v3951_v38 = vld [vmem:[#allocation2 + $0x300] ss:$8 sps:$4 sm:$0xff]  }
 0x11a   :  { %v256_v42 = vpop.f32.mrb[4].mxu1 }
 0x11b   :  { %v258_v43 = vpop.f32.mrb[5].mxu1  ;;  %v257_v12 = vadd.f32 %v256_v42, %v88_v8  ;;  %v3959_v42 = vld [vmem:[#allocation2 + $0x324] ss:$8 sps:$4 sm:$0xff]   ;;  %v3999_v8 = vld [vmem:[#allocation2 + $0x400] ss:$8 sps:$4 sm:$0xff]  }
 0x11c   :  { %714 = vmatpush1.bf16.msra.mxu0 %v3861_v39  ;;  %v259_v45 = vadd.f32 %v258_v43, %v92_v40  ;;  %v260_v46 = vpop.f32.mrb[6].mxu1  ;;  %v3956_v40 = vld [vmem:[#allocation2 + $0x314] ss:$8 sps:$4 sm:$0xff]   ;;  %v3957_v43 = vld [vmem:[#allocation2 + $0x320] ss:$8 sps:$4 sm:$0xff]  }
 0x11d   :  { %715 = vmatprep.subr.bf16.mxu0 %v3866_v41  ;;  %v261_v48 = vpop.f32.mrb[7].mxu1  ;;  %v265_v16 = vmax.f32 %v257_v12, 0.0  ;;  %v3954_v41 = vld [vmem:[#allocation2 + $0x310] ss:$8 sps:$4 sm:$0xff]   ;;  %v3965_v46 = vld [vmem:[#allocation2 + $0x344] ss:$8 sps:$4 sm:$0xff]  }
 0x11e   :  { %v266_v49 = vmax.f32 %v259_v45, 0.0  ;;  %v3960_v45 = vld [vmem:[#allocation2 + $0x330] ss:$8 sps:$4 sm:$0xff]   ;;  %v3968_v48 = vld [vmem:[#allocation2 + $0x354] ss:$8 sps:$4 sm:$0xff]  }
 0x11f   :  { %v335_v18 = vpack.c.bf16 %v265_v16, %v265_v16  ;;  %v4002_v12 = vld [vmem:[#allocation2 + $0x410] ss:$8 sps:$4 sm:$0xff]   ;;  %v4010_v16 = vld [vmem:[#allocation2 + $0x434] ss:$8 sps:$4 sm:$0xff]  }
 0x120   :  { %716 = vmatpush1.bf16.msra.mxu0 %v3864_v44  ;;  %v336_v51 = vpack.c.bf16 %v266_v49, %v266_v49  ;;  %v3962_v44 = vld [vmem:[#allocation2 + $0x334] ss:$8 sps:$4 sm:$0xff]   ;;  %v3966_v49 = vld [vmem:[#allocation2 + $0x350] ss:$8 sps:$4 sm:$0xff]  }
 0x121   :  { %717 = vmatprep.subr.bf16.mxu0 %v3869_v47  ;;  %v3963_v47 = vld [vmem:[#allocation2 + $0x340] ss:$8 sps:$4 sm:$0xff]  }
 0x122   :  { %741 = vmatprep.mubr.bf16.mxu0 %v336_v51  ;;  %v3969_v51 = vld [vmem:[#allocation2 + $0x360] ss:$8 sps:$4 sm:$0xff]  }
 0x124   :  { %718 = vmatpush1.bf16.msra.mxu0 %v3867_v50  ;;  %v3971_v50 = vld [vmem:[#allocation2 + $0x364] ss:$8 sps:$4 sm:$0xff]  }
 0x125   :  { %719 = vmatprep.subr.bf16.mxu0 %v3872_v52  ;;  %v3974_v52 = vld [vmem:[#allocation2 + $0x374] ss:$8 sps:$4 sm:$0xff]  }
 0x128   :  { %720 = vmatpush1.bf16.msra.mxu0 %v3870_v53  ;;  %v3972_v53 = vld [vmem:[#allocation2 + $0x370] ss:$8 sps:$4 sm:$0xff]  }
 0x129   :  { %721 = vmatprep.subr.bf16.mxu0 %v3875_v54  ;;  %v3977_v54 = vld [vmem:[#allocation2 + $0x384] ss:$8 sps:$4 sm:$0xff]  }
 0x12c   :  { %722 = vmatpush1.bf16.msra.mxu0 %v3873_v55  ;;  %v3975_v55 = vld [vmem:[#allocation2 + $0x380] ss:$8 sps:$4 sm:$0xff]  }
 0x12d   :  { %723 = vmatprep.subr.bf16.mxu0 %v3878_v56  ;;  %v3980_v56 = vld [vmem:[#allocation2 + $0x394] ss:$8 sps:$4 sm:$0xff]  }
 0x130   :  { %724 = vmatpush1.bf16.msra.mxu0 %v3876_v57  ;;  %v3978_v57 = vld [vmem:[#allocation2 + $0x390] ss:$8 sps:$4 sm:$0xff]  }
 0x131   :  { %725 = vmatprep.subr.bf16.mxu0 %v3881_v58  ;;  %v3983_v58 = vld [vmem:[#allocation2 + $0x3a4] ss:$8 sps:$4 sm:$0xff]  }
 0x134   :  { %726 = vmatpush1.bf16.msra.mxu0 %v3879_v59  ;;  %v3981_v59 = vld [vmem:[#allocation2 + $0x3a0] ss:$8 sps:$4 sm:$0xff]  }
 0x135   :  { %727 = vmatprep.subr.bf16.mxu0 %v3884_v60  ;;  %v3986_v60 = vld [vmem:[#allocation2 + $0x3b4] ss:$8 sps:$4 sm:$0xff]  }
 0x138   :  { %728 = vmatpush1.bf16.msra.mxu0 %v3882_v61  ;;  %v3984_v61 = vld [vmem:[#allocation2 + $0x3b0] ss:$8 sps:$4 sm:$0xff]  }
 0x139   :  { %729 = vmatprep.subr.bf16.mxu0 %v3887_v62  ;;  %v3989_v62 = vld [vmem:[#allocation2 + $0x3c4] ss:$8 sps:$4 sm:$0xff]  }
 0x13c   :  { %730 = vmatpush1.bf16.msra.mxu0 %v3885_v63  ;;  %v3987_v63 = vld [vmem:[#allocation2 + $0x3c0] ss:$8 sps:$4 sm:$0xff]  }
 0x13d   :  { %731 = vmatprep.subr.bf16.mxu0 %v3890_v1  ;;  %v3992_v1 = vld [vmem:[#allocation2 + $0x3d4] ss:$8 sps:$4 sm:$0xff]  }
 0x140   :  { %732 = vmatpush1.bf16.msra.mxu0 %v3888_v2  ;;  %v3990_v2 = vld [vmem:[#allocation2 + $0x3d0] ss:$8 sps:$4 sm:$0xff]  }
 0x141   :  { %733 = vmatprep.subr.bf16.mxu0 %v3893_v3  ;;  %v3995_v3 = vld [vmem:[#allocation2 + $0x3e4] ss:$8 sps:$4 sm:$0xff]  }
 0x144   :  { %734 = vmatpush1.bf16.msra.mxu0 %v3891_v4  ;;  %v3993_v4 = vld [vmem:[#allocation2 + $0x3e0] ss:$8 sps:$4 sm:$0xff]  }
 0x145   :  { %735 = vmatprep.subr.bf16.mxu0 %v3896_v6  ;;  %v3998_v6 = vld [vmem:[#allocation2 + $0x3f4] ss:$8 sps:$4 sm:$0xff]  }
 0x148   :  { %736 = vmatpush1.bf16.msra.mxu0 %v3894_v7  ;;  %v3996_v7 = vld [vmem:[#allocation2 + $0x3f0] ss:$8 sps:$4 sm:$0xff]  }
 0x149   :  { %737 = vmatprep.subr.bf16.mxu0 %v3899_v9  ;;  %v4001_v9 = vld [vmem:[#allocation2 + $0x404] ss:$8 sps:$4 sm:$0xff]  }
 0x14c   :  { %738 = vmatpush1.bf16.msra.mxu0 %v3897_v10  ;;  %v4004_v10 = vld [vmem:[#allocation2 + $0x414] ss:$8 sps:$4 sm:$0xff]  }
 0x14d   :  { %739 = vmatprep.subr.bf16.mxu0 %v3902_v13  ;;  %v4007_v13 = vld [vmem:[#allocation2 + $0x424] ss:$8 sps:$4 sm:$0xff]  }
 0x150   :  { %740 = vmatpush1.bf16.msra.mxu0 %v3900_v15  ;;  %v4005_v15 = vld [vmem:[#allocation2 + $0x420] ss:$8 sps:$4 sm:$0xff]  }
 0x151   :  { %1446 = vmatprep.subr.bf16.mxu0 %v4001_v9  ;;  %v1507_v9 = vld [vmem:[%s4683_s1] sm:$0x3] }
 0x152   :  { %1509 = vrot.lane.b32.xlu1 %v1507_v9, %s4332_s20 }
 0x153   :  { %742 = vmatmul.mubr.bf16.vlgmr.msra.gmra.mrb[0].mxu0 %v335_v18  ;;  %v4008_v18 = vld [vmem:[#allocation2 + $0x430] ss:$8 sps:$4 sm:$0xff]  }
 0x154   :  { %1447 = vmatpush1.bf16.msra.mxu0 %v3999_v8 }
 0x155   :  { %1448 = vmatprep.subr.bf16.mxu0 %v4004_v10 }
 0x158   :  { %1449 = vmatpush1.bf16.msra.mxu0 %v4002_v12 }
 0x159   :  { %1450 = vmatprep.subr.bf16.mxu0 %v4007_v13 }
 0x15c   :  { %1451 = vmatpush1.bf16.msra.mxu0 %v4005_v15 }
 0x15d   :  { %1452 = vmatprep.subr.bf16.mxu0 %v4010_v16 }
 0x160   :  { %1453 = vmatpush1.bf16.msra.mxu0 %v4008_v18 }
 0x161   :  { %1454 = vmatprep.subr.bf16.mxu0 %v4013_v21  ;;  %v1487_v21 = vld [vmem:[%s4688_s6 + $0x4] ss:$0 sm:$0xff] }
 0x164   :  { %1455 = vmatpush1.bf16.msra.mxu0 %v4011_v22 }
 0x165   :  { %1456 = vmatprep.subr.bf16.mxu0 %v4016_v23 }
 0x168   :  { %1457 = vmatpush1.bf16.msra.mxu0 %v4014_v19 }
 0x169   :  { %1458 = vmatprep.subr.bf16.mxu0 %v4019_v24 }
 0x16c   :  { %1459 = vmatpush1.bf16.msra.mxu0 %v4017_v25 }
 0x226   :  { %v743_v28 = vpop.f32.mrb[0].mxu0 }
 0x227   :  { %v3765_v29 = vadd.f32 %v743_v28, %v341_v26  ;;  %v745_v30 = vpop.f32.mrb[1].mxu0  ;;  %v4022_v26 = vld [vmem:[#allocation2 + $0x474] ss:$8 sps:$4 sm:$0xff]   ;;  %v4025_v28 = vld [vmem:[#allocation2 + $0x484] ss:$8 sps:$4 sm:$0xff]  }
 0x228   :  { %v3766_v31 = vadd.f32 %v745_v30, %v345_v27  ;;  %v747_v32 = vpop.f32.mrb[2].mxu0  ;;  %v4020_v27 = vld [vmem:[#allocation2 + $0x470] ss:$8 sps:$4 sm:$0xff]   ;;  %1460 = vmatprep.subr.bf16.mxu0 %v4022_v26  ;;  %v4028_v30 = vld [vmem:[#allocation2 + $0x494] ss:$8 sps:$4 sm:$0xff]  }
 0x229   :  { %v750_v33 = vmax.f32 %v3765_v29, 0.0  ;;  %v748_v34 = vpop.f32.mrb[3].mxu0  ;;  %1461 = vmatpush1.bf16.msra.mxu0 %v4020_v27  ;;  %v4023_v29 = vld [vmem:[#allocation2 + $0x480] ss:$8 sps:$4 sm:$0xff]   ;;  %v4031_v32 = vld [vmem:[#allocation2 + $0x4a4] ss:$8 sps:$4 sm:$0xff]  }
 0x22a   :  { %v751_v35 = vmax.f32 %v3766_v31, 0.0  ;;  %1462 = vmatprep.subr.bf16.mxu0 %v4025_v28  ;;  %v4026_v31 = vld [vmem:[#allocation2 + $0x490] ss:$8 sps:$4 sm:$0xff]   ;;  %v4034_v34 = vld [vmem:[#allocation2 + $0x4b4] ss:$8 sps:$4 sm:$0xff]  }
 0x22b   :  { %v786_v39 = vpack.c.bf16 %v750_v33, %v750_v33  ;;  %v4029_v33 = vld [vmem:[#allocation2 + $0x4a0] ss:$8 sps:$4 sm:$0xff]  }
 0x22c   :  { %v787_v36 = vpack.c.bf16 %v751_v35, %v751_v35  ;;  %v4032_v35 = vld [vmem:[#allocation2 + $0x4b0] ss:$8 sps:$4 sm:$0xff]  }
 0x22d   :  { %1463 = vmatpush1.bf16.msra.mxu0 %v4023_v29  ;;  %v4334_v29 = vmov 0.0  }
 0x22e   :  { %991 = vmatprep.mubr.bf16.mxu1 %v787_v36  ;;  %1464 = vmatprep.subr.bf16.mxu0 %v4028_v30  ;;  %v4037_v36 = vld [vmem:[#allocation2 + $0x4c4] ss:$8 sps:$4 sm:$0xff]  }
 0x22f   :  { %992 = vmatmul.mubr.bf16.vlgmr.msra.gmra.mrb[8].mxu1 %v786_v39  ;;  %v4040_v39 = vld [vmem:[#allocation2 + $0x4d4] ss:$8 sps:$4 sm:$0xff]  }
 0x230   :  { %1210 = vmatpush1.bf16.msra.mxu1 %v3951_v38  ;;  %v4035_v38 = vld [vmem:[#allocation2 + $0x4c0] ss:$8 sps:$4 sm:$0xff]  }
 0x231   :  { %1211 = vmatprep.subr.bf16.mxu1 %v3956_v40  ;;  %1465 = vmatpush1.bf16.msra.mxu0 %v4026_v31  ;;  %v4038_v40 = vld [vmem:[#allocation2 + $0x4d0] ss:$8 sps:$4 sm:$0xff]   ;;  %v1510_v31 = vpop.permute.xlu1 %1509 }
 0x232   :  { %1466 = vmatprep.subr.bf16.mxu0 %v4031_v32 }
 0x234   :  { %1212 = vmatpush1.bf16.msra.mxu1 %v3954_v41  ;;  %v3418_v41 = vld [vmem:[%s4688_s6 + $0x2] ss:$8 sm:$0x3] }
 0x235   :  { %1213 = vmatprep.subr.bf16.mxu1 %v3959_v42  ;;  %1467 = vmatpush1.bf16.msra.mxu0 %v4029_v33  ;;  %v792_v42 = vrot.slane %v3418_v41, %v4417_v17 }
 0x236   :  { %1468 = vmatprep.subr.bf16.mxu0 %v4034_v34  ;;  %v1523_v34 = vand.u32 127, %v77_v11 }
 0x238   :  { %1214 = vmatpush1.bf16.msra.mxu1 %v3957_v43  ;;  %v796_v43 = vrot.slane %v3418_v41, %v4425_v20  ;;  %vm1524_vm3 = vcmp.eq.s32.totalorder %v4414_v14, %v1523_v34 }
 0x239   :  { %1215 = vmatprep.subr.bf16.mxu1 %v3962_v44  ;;  %1469 = vmatpush1.bf16.msra.mxu0 %v4032_v35  ;;  %v1528_v35 = vadd.s32 2, %v1523_v34 }
 0x23a   :  { %1470 = vmatprep.subr.bf16.mxu0 %v4037_v36  ;;  %v1533_v36 = vadd.s32 4, %v1523_v34 }
 0x23b   :  { %vm1529_vm4 = vcmp.eq.s32.totalorder %v4414_v14, %v1528_v35  ;;  %v4062_v35 = vld [vmem:[#allocation2 + $0x550] ss:$8 sps:$4 sm:$0xff]  }
 0x23c   :  { %1216 = vmatpush1.bf16.msra.mxu1 %v3960_v45  ;;  %vm1534_vm5 = vcmp.eq.s32.totalorder %v4414_v14, %v1533_v36  ;;  %v4067_v36 = vld [vmem:[#allocation2 + $0x564] ss:$8 sps:$4 sm:$0xff]  }
 0x23d   :  { %1217 = vmatprep.subr.bf16.mxu1 %v3965_v46  ;;  %1471 = vmatpush1.bf16.msra.mxu0 %v4035_v38  ;;  %v3516_v38 = vsel %vm1524_vm3, 1.0, %v4334_v29 }
 0x23e   :  { %1472 = vmatprep.subr.bf16.mxu0 %v4040_v39  ;;  %v3517_v39 = vsel %vm1529_vm4, 1.0, %v4334_v29 }
 0x23f   :  { %v1532_v41 = vadd.f32 %v3517_v39, %v3516_v38  ;;  %v4065_v38 = vld [vmem:[#allocation2 + $0x560] ss:$8 sps:$4 sm:$0xff]   ;;  %v4070_v39 = vld [vmem:[#allocation2 + $0x574] ss:$8 sps:$4 sm:$0xff]  }
 0x240   :  { %1218 = vmatpush1.bf16.msra.mxu1 %v3963_v47 }
 0x241   :  { %1219 = vmatprep.subr.bf16.mxu1 %v3968_v48  ;;  %1473 = vmatpush1.bf16.msra.mxu0 %v4038_v40  ;;  %v1538_v40 = vadd.s32 6, %v1523_v34  ;;  %v4064_v34 = vld [vmem:[#allocation2 + $0x554] ss:$8 sps:$4 sm:$0xff]  }
 0x243   :  { %vm1539_vm6 = vcmp.eq.s32.totalorder %v4414_v14, %v1538_v40  ;;  %v4068_v40 = vld [vmem:[#allocation2 + $0x570] ss:$8 sps:$4 sm:$0xff]  }
 0x244   :  { %1220 = vmatpush1.bf16.msra.mxu1 %v3966_v49  ;;  %v3519_v11 = vsel %vm1539_vm6, 1.0, %v4334_v29 }
 0x245   :  { %1221 = vmatprep.subr.bf16.mxu1 %v3971_v50 }
 0x248   :  { %1222 = vmatpush1.bf16.msra.mxu1 %v3969_v51 }
 0x249   :  { %1223 = vmatprep.subr.bf16.mxu1 %v3974_v52 }
 0x24c   :  { %1224 = vmatpush1.bf16.msra.mxu1 %v3972_v53 }
 0x24d   :  { %1225 = vmatprep.subr.bf16.mxu1 %v3977_v54  ;;  %v4043_v54 = vld [vmem:[#allocation2 + $0x4e4] ss:$8 sps:$4 sm:$0xff]  }
 0x24e   :  { %1474 = vmatprep.subr.bf16.mxu0 %v4043_v54 }
 0x250   :  { %1226 = vmatpush1.bf16.msra.mxu1 %v3975_v55  ;;  %v4041_v55 = vld [vmem:[#allocation2 + $0x4e0] ss:$8 sps:$4 sm:$0xff]  }
 0x251   :  { %1227 = vmatprep.subr.bf16.mxu1 %v3980_v56  ;;  %1475 = vmatpush1.bf16.msra.mxu0 %v4041_v55  ;;  %v4046_v56 = vld [vmem:[#allocation2 + $0x4f4] ss:$8 sps:$4 sm:$0xff]  }
 0x252   :  { %1476 = vmatprep.subr.bf16.mxu0 %v4046_v56  ;;  %v1623_v55 = vld [vmem:[%s4686_s4 + $0x8] sm:$0xff] }
 0x253   :  { %v1627_v56 = vld [vmem:[%s4686_s4 + $0x28] sm:$0xff] }
 0x254   :  { %1228 = vmatpush1.bf16.msra.mxu1 %v3978_v57  ;;  %v4044_v57 = vld [vmem:[#allocation2 + $0x4f0] ss:$8 sps:$4 sm:$0xff]  }
 0x255   :  { %1229 = vmatprep.subr.bf16.mxu1 %v3983_v58  ;;  %1477 = vmatpush1.bf16.msra.mxu0 %v4044_v57  ;;  %v3451_v58 = vld [vmem:[%s4688_s6 + $0x3] ss:$8 sm:$0x3]  ;;  %v3525_v57 = vcombine.high %v1623_v55, %v1627_v56 }
 0x258   :  { %1230 = vmatpush1.bf16.msra.mxu1 %v3981_v59  ;;  %v1042_v59 = vrot.slane %v3451_v58, %v4417_v17 }
 0x259   :  { %1231 = vmatprep.subr.bf16.mxu1 %v3986_v60  ;;  %v1046_v60 = vrot.slane %v3451_v58, %v4425_v20  ;;  %v3524_v58 = vcombine.low %v1623_v55, %v1627_v56  ;;  %v4092_v55 = vld [vmem:[#allocation2 + $0x5f0] ss:$8 sps:$4 sm:$0xff]   ;;  %v4095_v56 = vld [vmem:[#allocation2 + $0x600] ss:$8 sps:$4 sm:$0xff]  }
 0x25c   :  { %1232 = vmatpush1.bf16.msra.mxu1 %v3984_v61 }
 0x25d   :  { %1233 = vmatprep.subr.bf16.mxu1 %v3989_v62 }
 0x260   :  { %1234 = vmatpush1.bf16.msra.mxu1 %v3987_v63 }
 0x261   :  { %1235 = vmatprep.subr.bf16.mxu1 %v3992_v1 }
 0x264   :  { %1236 = vmatpush1.bf16.msra.mxu1 %v3990_v2 }
 0x265   :  { %1237 = vmatprep.subr.bf16.mxu1 %v3995_v3 }
 0x268   :  { %1238 = vmatpush1.bf16.msra.mxu1 %v3993_v4 }
 0x269   :  { %1239 = vmatprep.subr.bf16.mxu1 %v3998_v6 }
 0x26c   :  { %1240 = vmatpush1.bf16.msra.mxu1 %v3996_v7 }
 0x26d   :  { %3760 = vmatprep.subr.mxu1 %v4334_v29 }
 0x302   :  { %v993_v44 = vpop.f32.mrb[8].mxu1 }
 0x303   :  { %v994_v45 = vadd.f32 %v993_v44, %v792_v42  ;;  %v995_v46 = vpop.f32.mrb[9].mxu1  ;;  %v3518_v42 = vsel %vm1534_vm5, 1.0, %v4334_v29  ;;  %v1622_v44 = vld [vmem:[%s4686_s4] sm:$0xff] }
 0x304   :  { %v996_v47 = vadd.f32 %v995_v46, %v796_v43  ;;  %v997_v48 = vpop.f32.mrb[10].mxu1  ;;  %v1537_v43 = vadd.f32 %v3518_v42, %v1532_v41  ;;  %v1630_v46 = vld [vmem:[%s4686_s4 + $0x40] sm:$0xff] }
 0x305   :  { %v1000_v49 = vmax.f32 %v994_v45, 0.0  ;;  %v998_v50 = vpop.f32.mrb[11].mxu1  ;;  %v1626_v45 = vld [vmem:[%s4686_s4 + $0x20] sm:$0xff] }
 0x306   :  { %v1001_v51 = vmax.f32 %v996_v47, 0.0  ;;  %v1634_v47 = vld [vmem:[%s4686_s4 + $0x60] sm:$0xff]  ;;  %v3523_v50 = vcombine.high %v1622_v44, %v1626_v45 }
 0x307   :  { %v1036_v53 = vpack.c.bf16 %v1000_v49, %v1000_v49  ;;  %v1542_v49 = vadd.f32 %v3519_v11, %v1537_v43  ;;  %v3530_v54 = vcombine.low %v1630_v46, %v1634_v47  ;;  %v4073_v41 = vld [vmem:[#allocation2 + $0x584] ss:$8 sps:$4 sm:$0xff]   ;;  %v4071_v42 = vld [vmem:[#allocation2 + $0x580] ss:$8 sps:$4 sm:$0xff]   ;;  %v4074_v43 = vld [vmem:[#allocation2 + $0x590] ss:$8 sps:$4 sm:$0xff]  }
 0x308   :  { %v1037_v52 = vpack.c.bf16 %v1001_v51, %v1001_v51  ;;  %v4076_v11 = vld [vmem:[#allocation2 + $0x594] ss:$8 sps:$4 sm:$0xff]  }
 0x30a   :  { %1241 = vmatprep.mubr.bf16.mxu1 %v1037_v52  ;;  %v3522_v52 = vcombine.low %v1622_v44, %v1626_v45  ;;  %v4079_v44 = vld [vmem:[#allocation2 + $0x5a4] ss:$8 sps:$4 sm:$0xff]   ;;  %v4077_v45 = vld [vmem:[#allocation2 + $0x5a0] ss:$8 sps:$4 sm:$0xff]  }
 0x30b   :  { %1242 = vmatmul.mubr.bf16.vlgmr.msra.gmra.mrb[12].mxu1 %v1036_v53  ;;  %v3531_v53 = vcombine.high %v1630_v46, %v1634_v47  ;;  %v4082_v46 = vld [vmem:[#allocation2 + $0x5b4] ss:$8 sps:$4 sm:$0xff]   ;;  %v4080_v47 = vld [vmem:[#allocation2 + $0x5b0] ss:$8 sps:$4 sm:$0xff]  }
 0x30c   :  { %3762 = vmatprep.mubr.msk.f32.mxu1 %vm4335_vm2, %v4334_v29  ;;  %vm1958_vm2 = vcmp.ge.s32.totalorder %v4414_v14, 6 }
 0x3de   :  { %v1243_v61 = vpop.f32.mrb[12].mxu1 }
 0x3df   :  { %v1244_v62 = vadd.f32 %v1243_v61, %v1042_v59  ;;  %v1245_v63 = vpop.f32.mrb[13].mxu1  ;;  %v1631_v59 = vld [vmem:[%s4686_s4 + $0x48] sm:$0xff] }
 0x3e0   :  { %v1246_v1 = vadd.f32 %v1245_v63, %v1046_v60  ;;  %v1247_v2 = vpop.f32.mrb[14].mxu1  ;;  %v1635_v60 = vld [vmem:[%s4686_s4 + $0x68] sm:$0xff] }
 0x3e1   :  { %v1250_v3 = vmax.f32 %v1244_v62, 0.0  ;;  %v1248_v4 = vpop.f32.mrb[15].mxu1  ;;  %v1624_v2 = vld [vmem:[%s4686_s4 + $0x10] sm:$0xff] }
 0x3e2   :  { %v1251_v6 = vmax.f32 %v1246_v1, 0.0  ;;  %v3533_v1 = vcombine.high %v1631_v59, %v1635_v60  ;;  %v3532_v4 = vcombine.low %v1631_v59, %v1635_v60  ;;  %v4098_v59 = vld [vmem:[#allocation2 + $0x610] ss:$8 sps:$4 sm:$0xff]   ;;  %v4103_v60 = vld [vmem:[#allocation2 + $0x624] ss:$8 sps:$4 sm:$0xff]  }
 0x3e3   :  { %v1252_v8 = vpack.c.bf16 %v1250_v3, %v1250_v3  ;;  %v1628_v3 = vld [vmem:[%s4686_s4 + $0x30] sm:$0xff] }
 0x3e4   :  { %v1253_v7 = vpack.c.bf16 %v1251_v6, %v1251_v6  ;;  %v3527_v6 = vcombine.high %v1624_v2, %v1628_v3  ;;  %v3526_v9 = vcombine.low %v1624_v2, %v1628_v3  ;;  %v4107_v2 = vld [vmem:[#allocation2 + $0x640] ss:$8 sps:$4 sm:$0xff]   ;;  %v4112_v3 = vld [vmem:[#allocation2 + $0x654] ss:$8 sps:$4 sm:$0xff]  }
 0x3e6   :  { %1478 = vmatprep.mubr.bf16.mxu0 %v1253_v7  ;;  %v1632_v7 = vld [vmem:[%s4686_s4 + $0x50] sm:$0xff] }
 0x3e7   :  { %1479 = vmatmul.mubr.bf16.vlgmr.msra.gmra.mrb[4].mxu0 %v1252_v8  ;;  %v1636_v8 = vld [vmem:[%s4686_s4 + $0x70] sm:$0xff] }
 0x4ba   :  { %v1480_v10 = vpop.f32.mrb[4].mxu0 }
 0x4bb   :  { %v1482_v12 = vpop.f32.mrb[5].mxu0  ;;  %v1490_v13 = vrot.slane %v1480_v10, 2  ;;  %v1488_v22 = vadd.f32 %v1487_v21, %v1480_v10  ;;  %v3535_v10 = vcombine.high %v1632_v7, %v1636_v8  ;;  %v1637_v21 = vld [vmem:[%s4686_s4 + $0x78] sm:$0xff] }
 0x4bc   :  { %v1484_v15 = vpop.f32.mrb[6].mxu0  ;;  %v1499_v18 = vrot.slane %v1482_v12, 6  ;;  %v1496_v19 = vrot.slane %v1482_v12, 4  ;;  %v1625_v12 = vld [vmem:[%s4686_s4 + $0x18] sm:$0xff] }
 0x4bd   :  { %1491 = vrot.lane.b32.xlu0 %v1490_v13, %s4333_s21  ;;  %v1485_v16 = vpop.f32.mrb[7].mxu0  ;;  %v1629_v13 = vld [vmem:[%s4686_s4 + $0x38] sm:$0xff]  ;;  %v3534_v15 = vcombine.low %v1632_v7, %v1636_v8  ;;  %v4118_v8 = vld [vmem:[#allocation2 + $0x674] ss:$8 sps:$4 sm:$0xff]  }
 0x4be   :  { %v3529_v16 = vcombine.high %v1625_v12, %v1629_v13  ;;  %v4113_v7 = vld [vmem:[#allocation2 + $0x660] ss:$8 sps:$4 sm:$0xff]  }
 0x4c1   :  { %1500 = vrot.lane.b32.xlu0 %v1499_v18, %s4333_s21  ;;  %v1633_v18 = vld [vmem:[%s4686_s4 + $0x58] sm:$0xff] }
 0x52f   :  { %v1492_v23 = vpop.permute.xlu0 %1491 }
 0x530   :  { %v1494_v24 = vadd.f32 %v1492_v23, %v1488_v22  ;;  %v3528_v22 = vcombine.low %v1625_v12, %v1629_v13  ;;  %v3537_v23 = vcombine.high %v1633_v18, %v1637_v21  ;;  %v4119_v12 = vld [vmem:[#allocation2 + $0x680] ss:$8 sps:$4 sm:$0xff]   ;;  %v4124_v13 = vld [vmem:[#allocation2 + $0x694] ss:$8 sps:$4 sm:$0xff]  }
 0x532   :  { %v1498_v25 = vadd.f32 %v1496_v19, %v1494_v24  ;;  %v3536_v19 = vcombine.low %v1633_v18, %v1637_v21  ;;  %v4049_v24 = vld [vmem:[#allocation2 + $0x504] ss:$8 sps:$4 sm:$0xff]   ;;  %v4125_v18 = vld [vmem:[#allocation2 + $0x6a0] ss:$8 sps:$4 sm:$0xff]   ;;  %v4130_v21 = vld [vmem:[#allocation2 + $0x6b4] ss:$8 sps:$4 sm:$0xff]  }
 0x533   :  { %v1501_v26 = vpop.permute.xlu0 %1500 }
 0x534   :  { %v1503_v27 = vadd.f32 %v1501_v26, %v1498_v25  ;;  %v4047_v25 = vld [vmem:[#allocation2 + $0x500] ss:$8 sps:$4 sm:$0xff]   ;;  %v4052_v26 = vld [vmem:[#allocation2 + $0x514] ss:$8 sps:$4 sm:$0xff]  }
 0x536   :  { %v1504_v28 = vmul.f32 0.5, %v1503_v27  ;;  %1519 = vst.msk [vmem:[%s4690_s8] sm:$0x3] %vm1518_vm1, %v1503_v27  ;;  %vm1936_vm1 = vmand %vm1934_vm14, %vm1935_vm15 }
 0x538   :  { %v1505_v30 = vmul.f32 1.442695, %v1504_v28  ;;  %v4055_v28 = vld [vmem:[#allocation2 + $0x524] ss:$8 sps:$4 sm:$0xff]  }
 0x53a   :  { %4271 = vpow2.f32 %v1505_v30  ;;  %v4053_v30 = vld [vmem:[#allocation2 + $0x520] ss:$8 sps:$4 sm:$0xff]  }
 0x544   :  { %v4272_v32 = vpop.eup %4271 }
 0x545   :  { %v1512_v33 = vmul.f32 %v4272_v32, %v1510_v31  ;;  %v4058_v31 = vld [vmem:[#allocation2 + $0x534] ss:$8 sps:$4 sm:$0xff]   ;;  %v4056_v32 = vld [vmem:[#allocation2 + $0x530] ss:$8 sps:$4 sm:$0xff]  }
 0x547   :  { %1514 = vrot.lane.b32.xlu1 %v1512_v33, %s4336_s25  ;;  %v4059_v33 = vld [vmem:[#allocation2 + $0x540] ss:$8 sps:$4 sm:$0xff]  }
 0x5b9   :  { %v1515_v48 = vpop.permute.xlu1 %1514 }
 0x5ba   :  { %v1517_v51 = vadd.f32 %v1515_v48, %v1503_v27  ;;  %v4050_v27 = vld [vmem:[#allocation2 + $0x510] ss:$8 sps:$4 sm:$0xff]   ;;  %v4085_v48 = vld [vmem:[#allocation2 + $0x5c4] ss:$8 sps:$4 sm:$0xff]  }
 0x5bc   :  { %3761 = vmatpush3.msk.msra.mxu1 %vm1547_vm7, %v1517_v51  ;;  %v4086_v51 = vld [vmem:[#allocation2 + $0x5d0] ss:$8 sps:$4 sm:$0xff]  }
 0x5bd   :  { %3763 = vmatmul.mubr.msk.f32.vlgmr.msra.gmra.mrb[16].mxu1 %vm1543_vm8, %v1542_v49  ;;  %1722 = vmatprep.subr.bf16.mxu1 %v3523_v50  ;;  %v4083_v49 = vld [vmem:[#allocation2 + $0x5c0] ss:$8 sps:$4 sm:$0xff]   ;;  %v4088_v50 = vld [vmem:[#allocation2 + $0x5d4] ss:$8 sps:$4 sm:$0xff]  }
 0x5be   :  { %1723 = vmatpush1.bf16.msra.mxu1 %v3522_v52  ;;  %1754 = vmatprep.mubr.bf16.mxu1 %v4331_v0  ;;  %v4091_v52 = vld [vmem:[#allocation2 + $0x5e4] ss:$8 sps:$4 sm:$0xff]  }
 0x5bf   :  { %1724 = vmatprep.subr.bf16.mxu1 %v3531_v53  ;;  %v4089_v53 = vld [vmem:[#allocation2 + $0x5e0] ss:$8 sps:$4 sm:$0xff]  }
 0x5c2   :  { %1725 = vmatpush1.bf16.msra.mxu1 %v3530_v54  ;;  %v4094_v54 = vld [vmem:[#allocation2 + $0x5f4] ss:$8 sps:$4 sm:$0xff]  }
 0x5c3   :  { %1763 = vmatprep.subr.bf16.mxu1 %v3525_v57  ;;  %v4097_v57 = vld [vmem:[#allocation2 + $0x604] ss:$8 sps:$4 sm:$0xff]  }
 0x5c4   :  { %2439 = vmatprep.subr.bf16.mxu0 %v4097_v57 }
 0x5c5   :  { %2440 = vmatpush1.bf16.msra.mxu0 %v4095_v56  ;;  %v3546_v56 = vsel %vm1936_vm1, 1.0, %v4334_v29 }
 0x690   :  { %v1617_v61 = vpop.f32.mrb[16].mxu1 }
 0x691   :  { %v1621_v62 = vpack.c.bf16 %v1617_v61, %v1617_v61  ;;  %v3764_v63 = vpop.f32.mrb[17].mxu1  ;;  %v4101_v61 = vld [vmem:[#allocation2 + $0x620] ss:$8 sps:$4 sm:$0xff]  }
 0x692   :  { %v4104_v63 = vld [vmem:[#allocation2 + $0x630] ss:$8 sps:$4 sm:$0xff]  }
 0x693   :  { %3538 = vmatmul.mubr.msk.bf16.vlgmr.msra.gmra.mrb[20].mxu1 %vm1718_vm9, %v1621_v62 }
 0x694   :  { %1764 = vmatpush1.bf16.msra.mxu1 %v3524_v58  ;;  %1795 = vmatprep.mubr.bf16.mxu1 %v4331_v0  ;;  %v4100_v58 = vld [vmem:[#allocation2 + $0x614] ss:$8 sps:$4 sm:$0xff]  }
 0x695   :  { %1765 = vmatprep.subr.bf16.mxu1 %v3533_v1  ;;  %2441 = vmatprep.subr.bf16.mxu0 %v4100_v58  ;;  %v4109_v1 = vld [vmem:[#allocation2 + $0x644] ss:$8 sps:$4 sm:$0xff]  }
 0x696   :  { %2442 = vmatpush1.bf16.msra.mxu0 %v4098_v59 }
 0x697   :  { %2443 = vmatprep.subr.bf16.mxu0 %v4103_v60 }
 0x698   :  { %1766 = vmatpush1.bf16.msra.mxu1 %v3532_v4  ;;  %v4110_v4 = vld [vmem:[#allocation2 + $0x650] ss:$8 sps:$4 sm:$0xff]  }
 0x699   :  { %1804 = vmatprep.subr.bf16.mxu1 %v3527_v6  ;;  %v4115_v6 = vld [vmem:[#allocation2 + $0x664] ss:$8 sps:$4 sm:$0xff]  }
 0x69a   :  { %2444 = vmatpush1.bf16.msra.mxu0 %v4101_v61  ;;  %v3549_v61 = vld [vmem:[%s4688_s6 + $0x24] ss:$8 sm:$0x3] }
 0x69b   :  { %3539 = vmatmul.mubr.msk.bf16.vlgmr.msra.gmra.mrb[24].mxu1 %vm1718_vm9, %v1621_v62 }
 0x69c   :  { %1805 = vmatpush1.bf16.msra.mxu1 %v3526_v9  ;;  %1836 = vmatprep.mubr.bf16.mxu1 %v4331_v0  ;;  %v4116_v9 = vld [vmem:[#allocation2 + $0x670] ss:$8 sps:$4 sm:$0xff]  }
 0x69d   :  { %1806 = vmatprep.subr.bf16.mxu1 %v3535_v10  ;;  %v4121_v10 = vld [vmem:[#allocation2 + $0x684] ss:$8 sps:$4 sm:$0xff]  }
 0x6a0   :  { %1807 = vmatpush1.bf16.msra.mxu1 %v3534_v15  ;;  %v4122_v15 = vld [vmem:[#allocation2 + $0x690] ss:$8 sps:$4 sm:$0xff]  }
 0x6a1   :  { %1845 = vmatprep.subr.bf16.mxu1 %v3529_v16  ;;  %v4127_v16 = vld [vmem:[#allocation2 + $0x6a4] ss:$8 sps:$4 sm:$0xff]  }
 0x6a3   :  { %3540 = vmatmul.mubr.msk.bf16.vlgmr.msra.gmra.mrb[28].mxu1 %vm1718_vm9, %v1621_v62 }
 0x6a4   :  { %1846 = vmatpush1.bf16.msra.mxu1 %v3528_v22  ;;  %1877 = vmatprep.mubr.bf16.mxu1 %v4331_v0  ;;  %v4061_v0 = vld [vmem:[#allocation2 + $0x544] ss:$8 sps:$4 sm:$0xff]   ;;  %v4128_v22 = vld [vmem:[#allocation2 + $0x6b0] ss:$8 sps:$4 sm:$0xff]  }
 0x6a5   :  { %1847 = vmatprep.subr.bf16.mxu1 %v3537_v23  ;;  %v4133_v23 = vld [vmem:[#allocation2 + $0x6c4] ss:$8 sps:$4 sm:$0xff]  }
 0x6a8   :  { %1848 = vmatpush1.bf16.msra.mxu1 %v3536_v19  ;;  %v4131_v19 = vld [vmem:[#allocation2 + $0x6c0] ss:$8 sps:$4 sm:$0xff]  }
 0x6a9   :  { %2189 = vmatprep.subr.bf16.mxu1 %v4049_v24  ;;  %v4136_v24 = vld [vmem:[#allocation2 + $0x6d4] ss:$8 sps:$4 sm:$0xff]  }
 0x6ab   :  { %3541 = vmatmul.mubr.msk.bf16.vlgmr.msra.gmra.mrb[32].mxu1 %vm1718_vm9, %v1621_v62  ;;  %v4106_v62 = vld [vmem:[#allocation2 + $0x634] ss:$8 sps:$4 sm:$0xff]  }
 0x6ac   :  { %2190 = vmatpush1.bf16.msra.mxu1 %v4047_v25  ;;  %2445 = vmatprep.subr.bf16.mxu0 %v4106_v62  ;;  %v4134_v25 = vld [vmem:[#allocation2 + $0x6d0] ss:$8 sps:$4 sm:$0xff]  }
 0x6ad   :  { %2191 = vmatprep.subr.bf16.mxu1 %v4052_v26  ;;  %2446 = vmatpush1.bf16.msra.mxu0 %v4104_v63 }
 0x6ae   :  { %2447 = vmatprep.subr.bf16.mxu0 %v4109_v1 }
 0x6b0   :  { %2192 = vmatpush1.bf16.msra.mxu1 %v4050_v27  ;;  %v3543_v27 = vld [vmem:[%s4688_s6 + $0x21] ss:$8 sm:$0x3] }
 0x6b1   :  { %2193 = vmatprep.subr.bf16.mxu1 %v4055_v28  ;;  %2448 = vmatpush1.bf16.msra.mxu0 %v4107_v2 }
 0x6b2   :  { %2449 = vmatprep.subr.bf16.mxu0 %v4112_v3  ;;  %v1969_v3 = vrot.slane %v3549_v61, %v4417_v17 }
 0x6b4   :  { %2194 = vmatpush1.bf16.msra.mxu1 %v4053_v30 }
 0x6b5   :  { %2195 = vmatprep.subr.bf16.mxu1 %v4058_v31  ;;  %2450 = vmatpush1.bf16.msra.mxu0 %v4110_v4  ;;  %v3545_v31 = vld [vmem:[%s4688_s6 + $0x22] ss:$8 sm:$0x3] }
 0x6b6   :  { %2451 = vmatprep.subr.bf16.mxu0 %v4115_v6  ;;  %v1973_v6 = vrot.slane %v3549_v61, %v4425_v20 }
 0x6b8   :  { %2196 = vmatpush1.bf16.msra.mxu1 %v4056_v32  ;;  %v1897_v32 = vrot.slane %v3543_v27, %v4417_v17 }
 0x6b9   :  { %2197 = vmatprep.subr.bf16.mxu1 %v4061_v0  ;;  %2452 = vmatpush1.bf16.msra.mxu0 %v4113_v7 }
 0x6ba   :  { %2453 = vmatprep.subr.bf16.mxu0 %v4118_v8  ;;  %v3548_v8 = vsel %vm1958_vm2, 1.0, %v4334_v29 }
 0x6bc   :  { %2198 = vmatpush1.bf16.msra.mxu1 %v4059_v33  ;;  %v1901_v33 = vrot.slane %v3543_v27, %v4425_v20  ;;  %v4140_v27 = vld [vmem:[#allocation2 + $0x6f0] ss:$8 sps:$4 sm:$0xff]  }
 0x6bd   :  { %2199 = vmatprep.subr.bf16.mxu1 %v4064_v34  ;;  %2454 = vmatpush1.bf16.msra.mxu0 %v4116_v9  ;;  %v1921_v34 = vrot.slane %v3545_v31, %v4417_v17 }
 0x6be   :  { %2455 = vmatprep.subr.bf16.mxu0 %v4121_v10 }
 0x6c0   :  { %2200 = vmatpush1.bf16.msra.mxu1 %v4062_v35  ;;  %v1925_v35 = vrot.slane %v3545_v31, %v4425_v20  ;;  %v4151_v31 = vld [vmem:[#allocation4 + $0xa4] ss:$16 sps:$4 sm:$0xff]  }
 0x6c1   :  { %2201 = vmatprep.subr.bf16.mxu1 %v4067_v36  ;;  %2456 = vmatpush1.bf16.msra.mxu0 %v4119_v12 }
 0x6c2   :  { %2457 = vmatprep.subr.bf16.mxu0 %v4124_v13 }
 0x6c4   :  { %2202 = vmatpush1.bf16.msra.mxu1 %v4065_v38  ;;  %v3542_v38 = vsel %vm1887_vm12, 1.0, %v4334_v29 }
 0x6c5   :  { %2203 = vmatprep.subr.bf16.mxu1 %v4070_v39  ;;  %2458 = vmatpush1.bf16.msra.mxu0 %v4122_v15 }
 0x6c6   :  { %2459 = vmatprep.subr.bf16.mxu0 %v4127_v16 }
 0x6c8   :  { %2204 = vmatpush1.bf16.msra.mxu1 %v4068_v40 }
 0x6c9   :  { %2205 = vmatprep.subr.bf16.mxu1 %v4073_v41  ;;  %2460 = vmatpush1.bf16.msra.mxu0 %v4125_v18  ;;  %v3544_v41 = vsel %vm1912_vm13, 1.0, %v4334_v29  ;;  %v4143_v29 = vld [vmem:[#allocation4 + $0x80] ss:$16 sps:$4 sm:$0xff]  }
 0x6ca   :  { %2461 = vmatprep.subr.bf16.mxu0 %v4130_v21 }
 0x6cc   :  { %2206 = vmatpush1.bf16.msra.mxu1 %v4071_v42 }
 0x6cd   :  { %2207 = vmatprep.subr.bf16.mxu1 %v4076_v11  ;;  %2462 = vmatpush1.bf16.msra.mxu0 %v4128_v22 }
 0x6ce   :  { %2463 = vmatprep.subr.bf16.mxu0 %v4133_v23 }
 0x6d0   :  { %2208 = vmatpush1.bf16.msra.mxu1 %v4074_v43 }
 0x6d1   :  { %2209 = vmatprep.subr.bf16.mxu1 %v4079_v44  ;;  %2464 = vmatpush1.bf16.msra.mxu0 %v4131_v19 }
 0x6d2   :  { %2465 = vmatprep.subr.bf16.mxu0 %v4136_v24  ;;  %v4139_v24 = vld [vmem:[#allocation2 + $0x6e4] ss:$8 sps:$4 sm:$0xff]  }
 0x6d4   :  { %2210 = vmatpush1.bf16.msra.mxu1 %v4077_v45  ;;  %v3547_v45 = vld [vmem:[%s4688_s6 + $0x23] ss:$8 sm:$0x3] }
 0x6d5   :  { %2211 = vmatprep.subr.bf16.mxu1 %v4082_v46  ;;  %2466 = vmatpush1.bf16.msra.mxu0 %v4134_v25  ;;  %v4137_v25 = vld [vmem:[#allocation2 + $0x6e0] ss:$8 sps:$4 sm:$0xff]  }
 0x6d6   :  { %2467 = vmatprep.subr.bf16.mxu0 %v4139_v24  ;;  %v4190_v24 = vld [vmem:[#allocation4 + $0x16c] ss:$16 sps:$4 sm:$0xff]  }
 0x6d8   :  { %2212 = vmatpush1.bf16.msra.mxu1 %v4080_v47 }
 0x6d9   :  { %2213 = vmatprep.subr.bf16.mxu1 %v4085_v48  ;;  %2468 = vmatpush1.bf16.msra.mxu0 %v4137_v25  ;;  %v4188_v25 = vld [vmem:[#allocation4 + $0x168] ss:$16 sps:$4 sm:$0xff]  }
 0x6dc   :  { %2214 = vmatpush1.bf16.msra.mxu1 %v4083_v49 }
 0x6dd   :  { %2215 = vmatprep.subr.bf16.mxu1 %v4088_v50 }
 0x6e0   :  { %2216 = vmatpush1.bf16.msra.mxu1 %v4086_v51 }
 0x6e1   :  { %2217 = vmatprep.subr.bf16.mxu1 %v4091_v52  ;;  %v1945_v52 = vrot.slane %v3547_v45, %v4417_v17 }
 0x6e4   :  { %2218 = vmatpush1.bf16.msra.mxu1 %v4089_v53 }
 0x6e5   :  { %2219 = vmatprep.subr.bf16.mxu1 %v4094_v54  ;;  %v1949_v54 = vrot.slane %v3547_v45, %v4425_v20  ;;  %v4191_v45 = vld [vmem:[#allocation4 + $0x180] ss:$16 sps:$4 sm:$0xff]  }
 0x6e8   :  { %2220 = vmatpush1.bf16.msra.mxu1 %v4092_v55 }
 0x766   :  { %v1756_v26 = vpop.f32.mrb[20].mxu1 }
 0x767   :  { %v1758_v28 = vpop.f32.mrb[21].mxu1  ;;  %v1904_v36 = vadd.f32 %v1897_v32, %v1756_v26  ;;  %v4142_v26 = vld [vmem:[#allocation2 + $0x6f4] ss:$8 sps:$4 sm:$0xff]   ;;  %v4149_v32 = vld [vmem:[#allocation4 + $0xa0] ss:$16 sps:$4 sm:$0xff]  }
 0x768   :  { %v1760_v30 = vpop.f32.mrb[22].mxu1  ;;  %v1905_v39 = vadd.f32 %v1901_v33, %v1758_v28  ;;  %2469 = vmatprep.subr.bf16.mxu0 %v4142_v26  ;;  %v4145_v28 = vld [vmem:[#allocation4 + $0x84] ss:$16 sps:$4 sm:$0xff]   ;;  %v4155_v33 = vld [vmem:[#allocation4 + $0xc0] ss:$16 sps:$4 sm:$0xff]  }
 0x769   :  { %v1761_v0 = vpop.f32.mrb[23].mxu1  ;;  %v1906_v46 = vmul.f32 %v3542_v38, %v1904_v36  ;;  %2470 = vmatpush1.bf16.msra.mxu0 %v4140_v27  ;;  %v4148_v30 = vld [vmem:[#allocation4 + $0x8c] ss:$16 sps:$4 sm:$0xff]   ;;  %2891 = vmatprep.subr.bf16.mxu1 %v4145_v28  ;;  %v4169_v36 = vld [vmem:[#allocation4 + $0x104] ss:$16 sps:$4 sm:$0xff]  }
 0x76a   :  { %v1907_v49 = vmul.f32 %v3542_v38, %v1905_v39  ;;  %2932 = vmatprep.subr.bf16.mxu0 %v4148_v30  ;;  %v4157_v0 = vld [vmem:[#allocation4 + $0xc4] ss:$16 sps:$4 sm:$0xff]   ;;  %v4167_v38 = vld [vmem:[#allocation4 + $0x100] ss:$16 sps:$4 sm:$0xff]   ;;  %v4196_v26 = vld [vmem:[#allocation4 + $0x18c] ss:$16 sps:$4 sm:$0xff]  }
 0x76b   :  { %v4175_v39 = vld [vmem:[#allocation4 + $0x124] ss:$16 sps:$4 sm:$0xff]   ;;  %v4194_v27 = vld [vmem:[#allocation4 + $0x188] ss:$16 sps:$4 sm:$0xff]   ;;  %v4208_v30 = vld [vmem:[#allocation4 + $0x1cc] ss:$16 sps:$4 sm:$0xff]  }
 0x76c   :  { %v4200_v28 = vld [vmem:[#allocation4 + $0x1a8] ss:$16 sps:$4 sm:$0xff]  }
 0x76e   :  { %v1797_v40 = vpop.f32.mrb[24].mxu1 }
 0x76f   :  { %v1928_v42 = vadd.f32 %v1921_v34, %v1797_v40  ;;  %v1799_v43 = vpop.f32.mrb[25].mxu1  ;;  %v4163_v34 = vld [vmem:[#allocation4 + $0xe4] ss:$16 sps:$4 sm:$0xff]   ;;  %v4173_v40 = vld [vmem:[#allocation4 + $0x120] ss:$16 sps:$4 sm:$0xff]  }
 0x770   :  { %v1929_v11 = vadd.f32 %v1925_v35, %v1799_v43  ;;  %v1801_v44 = vpop.f32.mrb[26].mxu1  ;;  %v4161_v35 = vld [vmem:[#allocation4 + $0xe0] ss:$16 sps:$4 sm:$0xff]   ;;  %v4187_v43 = vld [vmem:[#allocation4 + $0x164] ss:$16 sps:$4 sm:$0xff]  }
 0x771   :  { %v1930_v47 = vmul.f32 %v3544_v41, %v1928_v42  ;;  %v1802_v48 = vpop.f32.mrb[27].mxu1  ;;  %v4179_v42 = vld [vmem:[#allocation4 + $0x140] ss:$16 sps:$4 sm:$0xff]   ;;  %v4193_v44 = vld [vmem:[#allocation4 + $0x184] ss:$16 sps:$4 sm:$0xff]  }
 0x772   :  { %v1931_v50 = vmul.f32 %v3544_v41, %v1929_v11  ;;  %v4181_v41 = vld [vmem:[#allocation4 + $0x144] ss:$16 sps:$4 sm:$0xff]   ;;  %v4185_v11 = vld [vmem:[#allocation4 + $0x160] ss:$16 sps:$4 sm:$0xff]  }
 0x773   :  { %v1932_v51 = vadd.f32 %v1930_v47, %v1906_v46  ;;  %v4199_v46 = vld [vmem:[#allocation4 + $0x1a4] ss:$16 sps:$4 sm:$0xff]   ;;  %v4197_v47 = vld [vmem:[#allocation4 + $0x1a0] ss:$16 sps:$4 sm:$0xff]  }
 0x774   :  { %v1933_v53 = vadd.f32 %v1931_v50, %v1907_v49  ;;  %v4205_v48 = vld [vmem:[#allocation4 + $0x1c4] ss:$16 sps:$4 sm:$0xff]   ;;  %v4203_v49 = vld [vmem:[#allocation4 + $0x1c0] ss:$16 sps:$4 sm:$0xff]  }
 0x775   :  { %v4211_v50 = vld [vmem:[#allocation4 + $0x1e4] ss:$16 sps:$4 sm:$0xff]  }
 0x776   :  { %v1838_v55 = vpop.f32.mrb[28].mxu1 }
 0x777   :  { %v1952_v57 = vadd.f32 %v1945_v52, %v1838_v55  ;;  %v1840_v58 = vpop.f32.mrb[29].mxu1  ;;  %v4217_v52 = vld [vmem:[#allocation4 + $0x204] ss:$16 sps:$4 sm:$0xff]   ;;  %v4221_v55 = vld [vmem:[#allocation4 + $0x220] ss:$16 sps:$4 sm:$0xff]  }
 0x778   :  { %v1953_v59 = vadd.f32 %v1949_v54, %v1840_v58  ;;  %v1842_v60 = vpop.f32.mrb[30].mxu1  ;;  %v4223_v54 = vld [vmem:[#allocation4 + $0x224] ss:$16 sps:$4 sm:$0xff]  }
 0x779   :  { %v1954_v62 = vmul.f32 %v3546_v56, %v1952_v57  ;;  %v1843_v63 = vpop.f32.mrb[31].mxu1 }
 0x77a   :  { %v1955_v1 = vmul.f32 %v3546_v56, %v1953_v59  ;;  %v3550_v56 = vld [vmem:[%s4688_s6 + $0x5] ss:$8 sm:$0x3] }
 0x77b   :  { %v1956_v2 = vadd.f32 %v1954_v62, %v1932_v51  ;;  %v4209_v51 = vld [vmem:[#allocation4 + $0x1e0] ss:$16 sps:$4 sm:$0xff]   ;;  %v2022_v57 = vrot.slane %v3550_v56, %v4417_v17  ;;  %v2026_v58 = vrot.slane %v3550_v56, %v4425_v20 }
 0x77c   :  { %v1957_v4 = vadd.f32 %v1955_v1, %v1933_v53  ;;  %v4215_v53 = vld [vmem:[#allocation4 + $0x200] ss:$16 sps:$4 sm:$0xff]  }
 0x77e   :  { %v1879_v7 = vpop.f32.mrb[32].mxu1 }
 0x77f   :  { %v1976_v9 = vadd.f32 %v1969_v3, %v1879_v7  ;;  %v1881_v10 = vpop.f32.mrb[33].mxu1 }
 0x780   :  { %v1977_v12 = vadd.f32 %v1973_v6, %v1881_v10  ;;  %v1883_v13 = vpop.f32.mrb[34].mxu1  ;;  %v4146_v6 = vld [vmem:[#allocation4 + $0x88] ss:$16 sps:$4 sm:$0xff]   ;;  %v4160_v10 = vld [vmem:[#allocation4 + $0xcc] ss:$16 sps:$4 sm:$0xff]  }
 0x781   :  { %v1978_v15 = vmul.f32 %v3548_v8, %v1976_v9  ;;  %v1884_v16 = vpop.f32.mrb[35].mxu1  ;;  %v4152_v9 = vld [vmem:[#allocation4 + $0xa8] ss:$16 sps:$4 sm:$0xff]   ;;  %v4166_v13 = vld [vmem:[#allocation4 + $0xec] ss:$16 sps:$4 sm:$0xff]  }
 0x782   :  { %v1979_v18 = vmul.f32 %v3548_v8, %v1977_v12  ;;  %v4154_v8 = vld [vmem:[#allocation4 + $0xac] ss:$16 sps:$4 sm:$0xff]   ;;  %v4158_v12 = vld [vmem:[#allocation4 + $0xc8] ss:$16 sps:$4 sm:$0xff]  }
 0x783   :  { %v1980_v21 = vadd.f32 %v1978_v15, %v1956_v2  ;;  %v4164_v15 = vld [vmem:[#allocation4 + $0xe8] ss:$16 sps:$4 sm:$0xff]   ;;  %v4172_v16 = vld [vmem:[#allocation4 + $0x10c] ss:$16 sps:$4 sm:$0xff]  }
 0x784   :  { %v1981_v22 = vadd.f32 %v1979_v18, %v1957_v4  ;;  %v4170_v18 = vld [vmem:[#allocation4 + $0x108] ss:$16 sps:$4 sm:$0xff]  }
 0x785   :  { %v2016_v19 = vpack.c.bf16 %v1980_v21, %v1980_v21  ;;  %v4178_v21 = vld [vmem:[#allocation4 + $0x12c] ss:$16 sps:$4 sm:$0xff]  }
 0x786   :  { %v2017_v23 = vpack.c.bf16 %v1981_v22, %v1981_v22  ;;  %v4176_v22 = vld [vmem:[#allocation4 + $0x128] ss:$16 sps:$4 sm:$0xff]  }
 0x788   :  { %2221 = vmatprep.mubr.bf16.mxu1 %v2017_v23  ;;  %v4184_v23 = vld [vmem:[#allocation4 + $0x14c] ss:$16 sps:$4 sm:$0xff]  }
 0x789   :  { %2222 = vmatmul.mubr.bf16.vlgmr.msra.gmra.mrb[36].mxu1 %v2016_v19  ;;  %v4182_v19 = vld [vmem:[#allocation4 + $0x148] ss:$16 sps:$4 sm:$0xff]  }
 0x78a   :  { %2892 = vmatpush1.bf16.msra.mxu1 %v4143_v29  ;;  %v4202_v29 = vld [vmem:[#allocation4 + $0x1ac] ss:$16 sps:$4 sm:$0xff]  }
 0x78b   :  { %2893 = vmatprep.subr.bf16.mxu1 %v4151_v31  ;;  %v4206_v31 = vld [vmem:[#allocation4 + $0x1c8] ss:$16 sps:$4 sm:$0xff]  }
 0x78e   :  { %2894 = vmatpush1.bf16.msra.mxu1 %v4149_v32  ;;  %v4214_v32 = vld [vmem:[#allocation4 + $0x1ec] ss:$16 sps:$4 sm:$0xff]  }
 0x78f   :  { %2895 = vmatprep.subr.bf16.mxu1 %v4157_v0  ;;  %v4212_v0 = vld [vmem:[#allocation4 + $0x1e8] ss:$16 sps:$4 sm:$0xff]  }
 0x792   :  { %2896 = vmatpush1.bf16.msra.mxu1 %v4155_v33  ;;  %v4220_v33 = vld [vmem:[#allocation4 + $0x20c] ss:$16 sps:$4 sm:$0xff]  }
 0x793   :  { %2897 = vmatprep.subr.bf16.mxu1 %v4163_v34  ;;  %v4218_v34 = vld [vmem:[#allocation4 + $0x208] ss:$16 sps:$4 sm:$0xff]  }
 0x796   :  { %2898 = vmatpush1.bf16.msra.mxu1 %v4161_v35  ;;  %v4226_v35 = vld [vmem:[#allocation4 + $0x22c] ss:$16 sps:$4 sm:$0xff]  }
 0x797   :  { %2899 = vmatprep.subr.bf16.mxu1 %v4169_v36  ;;  %v4224_v36 = vld [vmem:[#allocation4 + $0x228] ss:$16 sps:$4 sm:$0xff]  }
 0x79a   :  { %2900 = vmatpush1.bf16.msra.mxu1 %v4167_v38  ;;  %v4229_v38 = vld [vmem:[#allocation4 + $0x244] ss:$16 sps:$4 sm:$0xff]  }
 0x79b   :  { %2901 = vmatprep.subr.bf16.mxu1 %v4175_v39  ;;  %v4232_v39 = vld [vmem:[#allocation4 + $0x24c] ss:$16 sps:$4 sm:$0xff]  }
 0x79e   :  { %2902 = vmatpush1.bf16.msra.mxu1 %v4173_v40  ;;  %v4227_v40 = vld [vmem:[#allocation4 + $0x240] ss:$16 sps:$4 sm:$0xff]  }
 0x79f   :  { %2903 = vmatprep.subr.bf16.mxu1 %v4181_v41  ;;  %v4230_v41 = vld [vmem:[#allocation4 + $0x248] ss:$16 sps:$4 sm:$0xff]  }
 0x7a2   :  { %2904 = vmatpush1.bf16.msra.mxu1 %v4179_v42  ;;  %v4235_v42 = vld [vmem:[#allocation4 + $0x264] ss:$16 sps:$4 sm:$0xff]  }
 0x7a3   :  { %2905 = vmatprep.subr.bf16.mxu1 %v4187_v43  ;;  %v4238_v43 = vld [vmem:[#allocation4 + $0x26c] ss:$16 sps:$4 sm:$0xff]  }
 0x7a6   :  { %2906 = vmatpush1.bf16.msra.mxu1 %v4185_v11  ;;  %v4233_v11 = vld [vmem:[#allocation4 + $0x260] ss:$16 sps:$4 sm:$0xff]  }
 0x7a7   :  { %2907 = vmatprep.subr.bf16.mxu1 %v4193_v44  ;;  %v4236_v44 = vld [vmem:[#allocation4 + $0x268] ss:$16 sps:$4 sm:$0xff]  }
 0x7aa   :  { %2908 = vmatpush1.bf16.msra.mxu1 %v4191_v45  ;;  %v4239_v45 = vld [vmem:[%s4687_s5 + $0x40] sm:$0xff]  }
 0x7ab   :  { %2909 = vmatprep.subr.bf16.mxu1 %v4199_v46  ;;  %v4240_v46 = vld [vmem:[%s4687_s5 + $0xc0] sm:$0xff]  }
 0x7ae   :  { %2910 = vmatpush1.bf16.msra.mxu1 %v4197_v47  ;;  %v3583_v47 = vld [vmem:[%s4688_s6 + $0x6] ss:$8 sm:$0x3] }
 0x7af   :  { %2911 = vmatprep.subr.bf16.mxu1 %v4205_v48  ;;  %v2272_v48 = vrot.slane %v3583_v47, %v4417_v17 }
 0x7b2   :  { %2912 = vmatpush1.bf16.msra.mxu1 %v4203_v49  ;;  %v2276_v49 = vrot.slane %v3583_v47, %v4425_v20 }
 0x7b3   :  { %2913 = vmatprep.subr.bf16.mxu1 %v4211_v50 }
 0x7b6   :  { %2914 = vmatpush1.bf16.msra.mxu1 %v4209_v51 }
 0x7b7   :  { %2915 = vmatprep.subr.bf16.mxu1 %v4217_v52 }
 0x7ba   :  { %2916 = vmatpush1.bf16.msra.mxu1 %v4215_v53 }
 0x7bb   :  { %2917 = vmatprep.subr.bf16.mxu1 %v4223_v54 }
 0x7be   :  { %2918 = vmatpush1.bf16.msra.mxu1 %v4221_v55 }
 0x7bf   :  { %2919 = vmatprep.subr.bf16.mxu1 %v4229_v38 }
 0x7c2   :  { %2920 = vmatpush1.bf16.msra.mxu1 %v4227_v40 }
 0x7c3   :  { %2921 = vmatprep.subr.bf16.mxu1 %v4235_v42 }
 0x7c6   :  { %2922 = vmatpush1.bf16.msra.mxu1 %v4233_v11 }
 0x7c7   :  { %3716 = vmatprep.subr.bf16.mxu1 %v4239_v45 }
 0x85c   :  { %v2223_v59 = vpop.f32.mrb[36].mxu1 }
 0x85d   :  { %v2224_v60 = vadd.f32 %v2223_v59, %v2022_v57  ;;  %v2225_v61 = vpop.f32.mrb[37].mxu1  ;;  %v4241_v59 = vld [vmem:[%s4687_s5] sm:$0xff]  }
 0x85e   :  { %v2226_v62 = vadd.f32 %v2225_v61, %v2026_v58  ;;  %v2227_v63 = vpop.f32.mrb[38].mxu1 }
 0x85f   :  { %v2230_v1 = vmax.f32 %v2224_v60, 0.0  ;;  %v2228_v2 = vpop.f32.mrb[39].mxu1  ;;  %v4242_v60 = vld [vmem:[%s4687_s5 + $0x80] sm:$0xff]   ;;  %v4244_v63 = vld [vmem:[%s4687_s5 + $0xc8] sm:$0xff]  }
 0x860   :  { %v2231_v3 = vmax.f32 %v2226_v62, 0.0  ;;  %v4243_v62 = vld [vmem:[%s4687_s5 + $0x48] sm:$0xff]  }
 0x861   :  { %v2266_v7 = vpack.c.bf16 %v2230_v1, %v2230_v1  ;;  %v4245_v1 = vld [vmem:[%s4687_s5 + $0x8] sm:$0xff]  }
 0x862   :  { %v2267_v4 = vpack.c.bf16 %v2231_v3, %v2231_v3  ;;  %v4246_v2 = vld [vmem:[%s4687_s5 + $0x88] sm:$0xff]   ;;  %v4247_v3 = vld [vmem:[%s4687_s5 + $0x50] sm:$0xff]  }
 0x864   :  { %2471 = vmatprep.mubr.bf16.mxu0 %v2267_v4  ;;  %v4248_v4 = vld [vmem:[%s4687_s5 + $0xd0] sm:$0xff]  }
 0x865   :  { %2472 = vmatmul.mubr.bf16.vlgmr.msra.gmra.mrb[8].mxu0 %v2266_v7  ;;  %v4250_v7 = vld [vmem:[%s4687_s5 + $0x90] sm:$0xff]  }
 0x866   :  { %2933 = vmatpush1.bf16.msra.mxu0 %v4146_v6  ;;  %v4249_v6 = vld [vmem:[%s4687_s5 + $0x10] sm:$0xff]  }
 0x867   :  { %2934 = vmatprep.subr.bf16.mxu0 %v4154_v8  ;;  %v4251_v8 = vld [vmem:[%s4687_s5 + $0x58] sm:$0xff]  }
 0x86a   :  { %2935 = vmatpush1.bf16.msra.mxu0 %v4152_v9  ;;  %v4252_v9 = vld [vmem:[%s4687_s5 + $0xd8] sm:$0xff]  }
 0x86b   :  { %2936 = vmatprep.subr.bf16.mxu0 %v4160_v10  ;;  %v4253_v10 = vld [vmem:[%s4687_s5 + $0x18] sm:$0xff]  }
 0x86e   :  { %2937 = vmatpush1.bf16.msra.mxu0 %v4158_v12  ;;  %v4254_v12 = vld [vmem:[%s4687_s5 + $0x98] sm:$0xff]  }
 0x86f   :  { %2938 = vmatprep.subr.bf16.mxu0 %v4166_v13  ;;  %v4255_v13 = vld [vmem:[%s4687_s5 + $0x60] sm:$0xff]  }
 0x872   :  { %2939 = vmatpush1.bf16.msra.mxu0 %v4164_v15  ;;  %v4256_v15 = vld [vmem:[%s4687_s5 + $0xe0] sm:$0xff]  }
 0x873   :  { %2940 = vmatprep.subr.bf16.mxu0 %v4172_v16  ;;  %v4257_v16 = vld [vmem:[%s4687_s5 + $0x20] sm:$0xff]  }
 0x876   :  { %2941 = vmatpush1.bf16.msra.mxu0 %v4170_v18  ;;  %v4258_v18 = vld [vmem:[%s4687_s5 + $0xa0] sm:$0xff]  }
 0x877   :  { %2942 = vmatprep.subr.bf16.mxu0 %v4178_v21  ;;  %v4259_v21 = vld [vmem:[%s4687_s5 + $0x68] sm:$0xff]  }
 0x87a   :  { %2943 = vmatpush1.bf16.msra.mxu0 %v4176_v22  ;;  %v4260_v22 = vld [vmem:[%s4687_s5 + $0xe8] sm:$0xff]  }
 0x87b   :  { %2944 = vmatprep.subr.bf16.mxu0 %v4184_v23  ;;  %v4261_v23 = vld [vmem:[%s4687_s5 + $0x28] sm:$0xff]  }
 0x87e   :  { %2945 = vmatpush1.bf16.msra.mxu0 %v4182_v19  ;;  %v4262_v19 = vld [vmem:[%s4687_s5 + $0xa8] sm:$0xff]  }
 0x87f   :  { %2946 = vmatprep.subr.bf16.mxu0 %v4190_v24  ;;  %v4263_v24 = vld [vmem:[%s4687_s5 + $0x70] sm:$0xff]  }
 0x882   :  { %2947 = vmatpush1.bf16.msra.mxu0 %v4188_v25  ;;  %v4264_v25 = vld [vmem:[%s4687_s5 + $0xf0] sm:$0xff]  }
 0x883   :  { %2948 = vmatprep.subr.bf16.mxu0 %v4196_v26  ;;  %v4265_v26 = vld [vmem:[%s4687_s5 + $0x30] sm:$0xff]  }
 0x886   :  { %2949 = vmatpush1.bf16.msra.mxu0 %v4194_v27  ;;  %v4266_v27 = vld [vmem:[%s4687_s5 + $0xb0] sm:$0xff]  }
 0x887   :  { %2950 = vmatprep.subr.bf16.mxu0 %v4202_v29  ;;  %v4267_v29 = vld [vmem:[%s4687_s5 + $0x78] sm:$0xff]  }
 0x88a   :  { %2951 = vmatpush1.bf16.msra.mxu0 %v4200_v28  ;;  %v4268_v28 = vld [vmem:[%s4687_s5 + $0xf8] sm:$0xff]  }
 0x88b   :  { %2952 = vmatprep.subr.bf16.mxu0 %v4208_v30  ;;  %v4269_v30 = vld [vmem:[%s4687_s5 + $0x38] sm:$0xff]  }
 0x88e   :  { %2953 = vmatpush1.bf16.msra.mxu0 %v4206_v31  ;;  %v4270_v31 = vld [vmem:[%s4687_s5 + $0xb8] sm:$0xff]  }
 0x88f   :  { %2954 = vmatprep.subr.bf16.mxu0 %v4214_v32  ;;  %v3616_v32 = vld [vmem:[%s4688_s6 + $0x7] ss:$8 sm:$0xf] }
 0x892   :  { %2955 = vmatpush1.bf16.msra.mxu0 %v4212_v0  ;;  %v2554_v0 = vrot.slane %v3616_v32, %v4417_v17 }
 0x893   :  { %2956 = vmatprep.subr.bf16.mxu0 %v4220_v33  ;;  %v2562_v33 = vrot.slane %v3616_v32, %v87_v5 }
 0x896   :  { %2957 = vmatpush1.bf16.msra.mxu0 %v4218_v34  ;;  %v2558_v34 = vrot.slane %v3616_v32, %v4425_v20 }
 0x897   :  { %2958 = vmatprep.subr.bf16.mxu0 %v4226_v35  ;;  %v2566_v35 = vrot.slane %v3616_v32, %v91_v37 }
 0x89a   :  { %2959 = vmatpush1.bf16.msra.mxu0 %v4224_v36 }
 0x89b   :  { %2960 = vmatprep.subr.bf16.mxu0 %v4232_v39 }
 0x89e   :  { %2961 = vmatpush1.bf16.msra.mxu0 %v4230_v41 }
 0x89f   :  { %2962 = vmatprep.subr.bf16.mxu0 %v4238_v43 }
 0x8a2   :  { %2963 = vmatpush1.bf16.msra.mxu0 %v4236_v44 }
 0x8a3   :  { %3738 = vmatprep.subr.bf16.mxu0 %v4240_v46 }
 0x938   :  { %v2473_v50 = vpop.f32.mrb[8].mxu0 }
 0x939   :  { %v2474_v51 = vadd.f32 %v2473_v50, %v2272_v48  ;;  %v2475_v52 = vpop.f32.mrb[9].mxu0 }
 0x93a   :  { %v2476_v53 = vadd.f32 %v2475_v52, %v2276_v49  ;;  %v2477_v54 = vpop.f32.mrb[10].mxu0 }
 0x93b   :  { %v2480_v55 = vmax.f32 %v2474_v51, 0.0  ;;  %v2478_v56 = vpop.f32.mrb[11].mxu0 }
 0x93c   :  { %v2481_v57 = vmax.f32 %v2476_v53, 0.0  ;;  %v3041_v53 = vld [vmem:[%s4688_s6 + $0x20] ss:$0 sm:$0xff] }
 0x93d   :  { %v2548_v61 = vpack.c.bf16 %v2480_v55, %v2480_v55 }
 0x93e   :  { %v2549_v58 = vpack.c.bf16 %v2481_v57, %v2481_v57 }
 0x940   :  { %2923 = vmatprep.mubr.bf16.mxu1 %v2549_v58  ;;  %2964 = vmatprep.mubr.bf16.mxu0 %v2549_v58 }
 0x941   :  { %2924 = vmatmul.mubr.bf16.vlgmr.msra.gmra.mrb[40].mxu1 %v2548_v61  ;;  %2965 = vmatmul.mubr.bf16.vlgmr.msra.gmra.mrb[12].mxu0 %v2548_v61 }
 0x942   :  { %3717 = vmatpush3.bf16.msra.mxu1 %v4241_v59  ;;  %3739 = vmatpush3.bf16.msra.mxu0 %v4242_v60 }
 0x943   :  { %3718 = vmatprep.subr.bf16.mxu1 %v4243_v62  ;;  %3740 = vmatprep.subr.bf16.mxu0 %v4244_v63 }
 0x946   :  { %3719 = vmatpush3.bf16.msra.mxu1 %v4245_v1  ;;  %3741 = vmatpush3.bf16.msra.mxu0 %v4246_v2 }
 0x947   :  { %3720 = vmatprep.subr.bf16.mxu1 %v4247_v3  ;;  %3742 = vmatprep.subr.bf16.mxu0 %v4248_v4 }
 0x94a   :  { %3721 = vmatpush3.bf16.msra.mxu1 %v4249_v6  ;;  %3743 = vmatpush3.bf16.msra.mxu0 %v4250_v7 }
 0x94b   :  { %3722 = vmatprep.subr.bf16.mxu1 %v4251_v8  ;;  %3744 = vmatprep.subr.bf16.mxu0 %v4252_v9 }
 0x94e   :  { %3723 = vmatpush3.bf16.msra.mxu1 %v4253_v10  ;;  %3745 = vmatpush3.bf16.msra.mxu0 %v4254_v12 }
 0x94f   :  { %3724 = vmatprep.subr.bf16.mxu1 %v4255_v13  ;;  %3746 = vmatprep.subr.bf16.mxu0 %v4256_v15 }
 0x952   :  { %3725 = vmatpush3.bf16.msra.mxu1 %v4257_v16  ;;  %3747 = vmatpush3.bf16.msra.mxu0 %v4258_v18 }
 0x953   :  { %3726 = vmatprep.subr.bf16.mxu1 %v4259_v21  ;;  %3748 = vmatprep.subr.bf16.mxu0 %v4260_v22 }
 0x956   :  { %3727 = vmatpush3.bf16.msra.mxu1 %v4261_v23  ;;  %3749 = vmatpush3.bf16.msra.mxu0 %v4262_v19 }
 0x957   :  { %3728 = vmatprep.subr.bf16.mxu1 %v4263_v24  ;;  %3750 = vmatprep.subr.bf16.mxu0 %v4264_v25 }
 0x95a   :  { %3729 = vmatpush3.bf16.msra.mxu1 %v4265_v26  ;;  %3751 = vmatpush3.bf16.msra.mxu0 %v4266_v27 }
 0x95b   :  { %3730 = vmatprep.subr.bf16.mxu1 %v4267_v29  ;;  %3752 = vmatprep.subr.bf16.mxu0 %v4268_v28 }
 0x95e   :  { %3731 = vmatpush3.bf16.msra.mxu1 %v4269_v30  ;;  %3753 = vmatpush3.bf16.msra.mxu0 %v4270_v31 }
 0xa14   :  { %v2925_v36 = vpop.f32.mrb[40].mxu1  ;;  %v2966_v38 = vpop.f32.mrb[12].mxu0 }
 0xa15   :  { %v2926_v39 = vadd.f32 %v2925_v36, %v2554_v0  ;;  %v2967_v40 = vadd.f32 %v2966_v38, %v2562_v33  ;;  %v2927_v41 = vpop.f32.mrb[41].mxu1  ;;  %v2968_v42 = vpop.f32.mrb[13].mxu0 }
 0xa16   :  { %v2928_v43 = vadd.f32 %v2927_v41, %v2558_v34  ;;  %v2969_v11 = vadd.f32 %v2968_v42, %v2566_v35  ;;  %v2929_v44 = vpop.f32.mrb[42].mxu1  ;;  %v2970_v45 = vpop.f32.mrb[14].mxu0 }
 0xa17   :  { %v2973_v46 = vmax.f32 %v2926_v39, 0.0  ;;  %v2975_v17 = vmax.f32 %v2967_v40, 0.0  ;;  %v2930_v47 = vpop.f32.mrb[43].mxu1  ;;  %v2971_v48 = vpop.f32.mrb[15].mxu0 }
 0xa18   :  { %v2974_v5 = vmax.f32 %v2928_v43, 0.0  ;;  %v2976_v49 = vmax.f32 %v2969_v11, 0.0 }
 0xa19   :  { %v3042_v14 = vpack.c.bf16 %v2973_v46, %v2973_v46  ;;  %v3044_v37 = vpack.c.bf16 %v2975_v17, %v2975_v17 }
 0xa1a   :  { %v3043_v20 = vpack.c.bf16 %v2974_v5, %v2974_v5  ;;  %v3045_v50 = vpack.c.bf16 %v2976_v49, %v2976_v49 }
 0xa1c   :  { %3270 = vmatprep.mubr.bf16.mxu1 %v3043_v20  ;;  %3310 = vmatprep.mubr.bf16.mxu0 %v3045_v50 }
 0xa1d   :  { %3271 = vmatmul.mubr.bf16.vlgmr.msra.gmra.mrb[44].mxu1 %v3042_v14  ;;  %3311 = vmatmul.mubr.bf16.vlgmr.msra.gmra.mrb[16].mxu0 %v3044_v37 }
 0xaf0   :  { %v3732_v51 = vpop.f32.mrb[44].mxu1  ;;  %v3754_v52 = vpop.f32.mrb[16].mxu0 }
 0xaf1   :  { %v3733_v54 = vpop.f32.mrb[45].mxu1  ;;  %v3755_v55 = vpop.f32.mrb[17].mxu0 }
 0xaf2   :  { %v3734_v56 = vadd.f32 %v3733_v54, %v3732_v51  ;;  %v3756_v57 = vadd.f32 %v3755_v55, %v3754_v52  ;;  %v3735_v58 = vpop.f32.mrb[46].mxu1  ;;  %v3757_v59 = vpop.f32.mrb[18].mxu0 }
 0xaf3   :  { %v3736_v60 = vpop.f32.mrb[47].mxu1  ;;  %v3758_v61 = vpop.f32.mrb[19].mxu0 }
 0xaf4   :  { %v3273_v62 = vadd.f32 %v3734_v56, %v3041_v53 }
 0xaf6   :  { %v3313_v63 = vadd.f32 %v3756_v57, %v3273_v62 }
 0xaf8   :  { %v3713_v1 = vmul.f32 -1.442695, %v3313_v63 }
 0xafa   :  { %4273 = vpow2.f32 %v3713_v1 }
 0xb04   :  { %v4274_v2 = vpop.eup %4273 }
 0xb05   :  { %v3321_v3 = vadd.f32 1.0, %v4274_v2 }
 0xb07   :  { %4275 = vrcp.f32 %v3321_v3 }
 0xb11   :  { %v4276_v4 = vpop.eup %4275 }
 0xb12   :  { %3324 = vst.msk [vmem:[%s4689_s7] sm:$0xff] %vm177_vm0, %v4276_v4 }
 0xb13   :  { %3333 = vsyncpa [#allocation3], 1 }
 0xb14   :  { %3334 = vsyncpa [#allocation5], 1 }

</bundles_post_ra>
